<compile_context>
chip_gen: v6e
topology: v6e:2x2x1
jax: 0.10.0
libtpu: 0.0.40
codegen_flags: <defaults>
</compile_context>

<pallas_src>
import math

import jax
import jax.numpy as jnp
from jax.experimental import pallas as pl
from jax.experimental.pallas import tpu as pltpu

_BN_EPS = 1e-5


# ---------------------------------------------------------------------------
# Wrapper-side packing helpers (pure JAX, trace-time, tiny matrices).
# ---------------------------------------------------------------------------

def _toeplitz_conv_weight(w_hwio, width):
    """(3,3,ci,co) HWIO conv weights -> (3, ci*width, co*width) banded matrices.

    Row lane order is (ci, wi), column lane order is (co, wo); block kh maps the
    image row at vertical offset kh-1.  The kw taps and the zero padding along
    W are folded into the band structure, so each 3x3 conv becomes 3 lane-dense
    MXU dots on packed rows.
    """
    kh_sz, kw_sz, ci, co = w_hwio.shape
    d = jnp.arange(width)[:, None] - jnp.arange(width)[None, :]      # wi - wo
    blocks = []
    for kh in range(kh_sz):
        t = jnp.zeros((ci, width, co, width), jnp.float32)
        for kw in range(kw_sz):
            band = (d == (kw - 1)).astype(jnp.float32)               # (wi, wo)
            t = t + (w_hwio[kh, kw].astype(jnp.float32)[:, None, :, None]
                     * band[None, :, None, :])
        blocks.append(t.reshape(ci * width, co * width))
    return jnp.stack(blocks, axis=0)                                 # (3, ci*w, co*w)


def _proj_weight(wid, width):
    """1x1 projection (ci, co) -> block-diagonal (ci*width, co*width) matrix."""
    ci, co = wid.shape
    eye = jnp.eye(width, dtype=jnp.float32)
    m = wid.astype(jnp.float32)[:, None, :, None] * eye[None, :, None, :]
    return m.reshape(ci * width, co * width)


def _row_shift_mats(n, h, dtype):
    """0/1 matrices fetching the image row above / below (zero at image edges)."""
    r = n * h
    i = jnp.arange(r)
    rim = i % h                                                       # row within image
    s_dn = ((i[:, None] - 1 == i[None, :]) & (rim[:, None] != 0)).astype(dtype)
    s_up = ((i[:, None] + 1 == i[None, :]) & (rim[:, None] != h - 1)).astype(dtype)
    return s_dn, s_up


def _bn_group_mean_mat(c, width, count):
    """(c*width, c*width) matrix: right-multiplying a per-lane row-sum by it
    yields the per-channel mean broadcast back to every (c, w) lane."""
    ch = jnp.repeat(jnp.arange(c), width)
    return (ch[:, None] == ch[None, :]).astype(jnp.float32) / float(count)


def _tile_per_channel(v, width):
    """(c,) per-channel vector -> (1, c*width) per-lane vector, lane order (c, w)."""
    return jnp.repeat(v.astype(jnp.float32), width).reshape(1, -1)


# ---------------------------------------------------------------------------
# Kernel
# ---------------------------------------------------------------------------

def _make_resblock_kernel(use_proj, mxu_dt):
    f32 = jnp.float32

    def kernel(x_ref, sdn_ref, sup_ref, t1_ref, t2_ref, mbn_ref,
               g1_ref, be1_ref, g2_ref, be2_ref, *rest):
        if use_proj:
            pskip_ref, out_ref = rest
        else:
            (out_ref,) = rest

        x = x_ref[...]                       # (R, c_in*w) f32, lane order (c, w)
        sdn = sdn_ref[...]                   # (R, R) MXU dtype (0/1 row-above fetch)
        sup = sup_ref[...]                   # (R, R) MXU dtype (0/1 row-below fetch)
        mbn = mbn_ref[...]                   # (L, L) f32 channel-group averaging

        def conv3x3(act_f32, t_ref):
            # act: (R, Lin) f32; t_ref: (3, Lin, Lout) banded Toeplitz weights.
            a = act_f32.astype(mxu_dt)
            row_up = jnp.dot(sdn, a, preferred_element_type=f32).astype(mxu_dt)
            row_dn = jnp.dot(sup, a, preferred_element_type=f32).astype(mxu_dt)
            acc = jnp.dot(row_up, t_ref[0], preferred_element_type=f32)
            acc = acc + jnp.dot(a, t_ref[1], preferred_element_type=f32)
            acc = acc + jnp.dot(row_dn, t_ref[2], preferred_element_type=f32)
            return acc                        # (R, Lout) f32

        def bn_fold(z, gamma_l, beta_l):
            # Training-mode BN, two-pass f32 stats, folded into one per-lane FMA.
            mean = jnp.dot(jnp.sum(z, axis=0, keepdims=True), mbn,
                           preferred_element_type=f32)               # (1, L)
            zc = z - mean
            var = jnp.dot(jnp.sum(zc * zc, axis=0, keepdims=True), mbn,
                          preferred_element_type=f32)                # (1, L)
            scale = gamma_l * jax.lax.rsqrt(var + _BN_EPS)
            return zc * scale + beta_l

        # conv1 (bias dropped: cancelled by training-mode BN) -> BN1 -> ReLU
        h1 = jnp.maximum(bn_fold(conv3x3(x, t1_ref),
                                 g1_ref[...], be1_ref[...]), 0.0)
        # conv2 (bias dropped) -> BN2 (projection bias pre-folded into be2)
        h2 = bn_fold(conv3x3(h1, t2_ref), g2_ref[...], be2_ref[...])

        # skip: identity, or lane-dense block-diagonal 1x1 projection
        if use_proj:
            y = jnp.dot(x.astype(mxu_dt), pskip_ref[...],
                        preferred_element_type=f32)
        else:
            y = x

        out_ref[...] = jnp.maximum(h2 + y, 0.0)

    return kernel


# ---------------------------------------------------------------------------
# Wrapper
# ---------------------------------------------------------------------------

def resblock_forward(x_nchw, params, *, c_in, c_out, bdown=False, mxu_bf16=True):
    """Pallas ResBlock forward.  Input/output NCHW f32, training-mode BN."""
    if bdown:
        # TODO(synk): stride-2 (bdown=True) conv1/identity path not implemented.
        raise NotImplementedError("bdown=True (stride 2) not supported")
    n, c, h, w = x_nchw.shape
    assert c == c_in
    use_proj = c_in != c_out
    mxu_dt = jnp.bfloat16 if mxu_bf16 else jnp.float32

    rows = n * h
    l_out = c_out * w

    # Lane-dense packed layout: rows = (n, h), lanes = (channel, width).
    x_rows = (jnp.transpose(x_nchw.astype(jnp.float32), (0, 2, 1, 3))
              .reshape(rows, c_in * w))

    s_dn, s_up = _row_shift_mats(n, h, mxu_dt)
    t1 = _toeplitz_conv_weight(params["w1"], w).astype(mxu_dt)       # (3, ci*w, co*w)
    t2 = _toeplitz_conv_weight(params["w2"], w).astype(mxu_dt)       # (3, co*w, co*w)
    m_bn = _bn_group_mean_mat(c_out, w, n * h * w)                    # f32

    g1 = _tile_per_channel(params["g1"], w)
    be1 = _tile_per_channel(params["be1"], w)
    g2 = _tile_per_channel(params["g2"], w)
    be2 = _tile_per_channel(params["be2"], w)

    args = [x_rows, s_dn, s_up, t1, t2, m_bn, g1, be1, g2]
    if use_proj:
        # Fold the 1x1-projection bias into BN2's folded shift (free).
        args.append(be2 + _tile_per_channel(params["bid"], w))
        args.append(_proj_weight(params["wid"], w).astype(mxu_dt))
    else:
        args.append(be2)

    vmem = pl.BlockSpec(memory_space=pltpu.MemorySpace.VMEM)
    out_rows = pl.pallas_call(
        _make_resblock_kernel(use_proj, mxu_dt),
        out_shape=jax.ShapeDtypeStruct((rows, l_out), jnp.float32),
        in_specs=[vmem] * len(args),
        out_specs=vmem,
    )(*args)

    # Unpack lane-dense rows back to NCHW (wrapper-side layout plumbing only;
    # in a full network the packed layout would stay resident across blocks).
    return jnp.transpose(out_rows.reshape(n, h, c_out, w), (0, 2, 1, 3))


# ---------------------------------------------------------------------------
# Pure-JAX reference mirroring the PyTorch forward (training-mode BN)
# ---------------------------------------------------------------------------

def resblock_reference(x_nchw, params, *, c_in, c_out):
    hi = jax.lax.Precision.HIGHEST

    def conv3x3(x, w_hwio, b):
        w_oihw = jnp.transpose(w_hwio, (3, 2, 0, 1))
        out = jax.lax.conv_general_dilated(
            x, w_oihw, window_strides=(1, 1), padding=[(1, 1), (1, 1)],
            dimension_numbers=("NCHW", "OIHW", "NCHW"), precision=hi)
        return out + b[None, :, None, None]

    def bn(x, g, be):
        mean = jnp.mean(x, axis=(0, 2, 3), keepdims=True)
        var = jnp.mean((x - mean) ** 2, axis=(0, 2, 3), keepdims=True)
        return ((x - mean) * jax.lax.rsqrt(var + _BN_EPS)
                * g[None, :, None, None] + be[None, :, None, None])

    y = x_nchw
    x = conv3x3(x_nchw, params["w1"], params["b1"])
    x = jax.nn.relu(bn(x, params["g1"], params["be1"]))
    x = conv3x3(x, params["w2"], params["b2"])
    x = bn(x, params["g2"], params["be2"])
    if c_in != c_out:
        w_id = params["wid"].T[:, :, None, None]          # (c_out, c_in, 1, 1)
        y = jax.lax.conv_general_dilated(
            y, w_id, (1, 1), [(0, 0), (0, 0)],
            dimension_numbers=("NCHW", "OIHW", "NCHW"), precision=hi)
        y = y + params["bid"][None, :, None, None]
    return jax.nn.relu(x + y)


def _make_params(key, c_in, c_out, use_proj):
    k = jax.random.split(key, 8)
    params = {
        # conv weights in HWIO; deterministic synthetic init (not a checkpoint).
        "w1": jax.random.normal(k[0], (3, 3, c_in, c_out), jnp.float32) / math.sqrt(9 * c_in),
        "b1": jax.random.normal(k[1], (c_out,), jnp.float32) * 0.1,
        "g1": 1.0 + 0.1 * jax.random.normal(k[2], (c_out,), jnp.float32),
        "be1": 0.1 * jax.random.normal(k[3], (c_out,), jnp.float32),
        "w2": jax.random.normal(k[4], (3, 3, c_out, c_out), jnp.float32) / math.sqrt(9 * c_out),
        "b2": jax.random.normal(k[5], (c_out,), jnp.float32) * 0.1,
        "g2": 1.0 + 0.1 * jax.random.normal(k[6], (c_out,), jnp.float32),
        "be2": 0.1 * jax.random.normal(k[7], (c_out,), jnp.float32),
    }
    if use_proj:
        kk = jax.random.split(k[0], 2)
        params["wid"] = jax.random.normal(kk[0], (c_in, c_out), jnp.float32) / math.sqrt(c_in)
        params["bid"] = jax.random.normal(kk[1], (c_out,), jnp.float32) * 0.1
    return params


if __name__ == "__main__":
    key = jax.random.PRNGKey(0)
    k_p1, k_p2, k_x1, k_x2 = jax.random.split(key, 4)

    # --- case 1: c_in != c_out (1x1 projection skip path), x = (2, 4, 16, 16) ---
    c_in, c_out = 4, 8
    n, hh, ww = 2, 16, 16
    params1 = _make_params(k_p1, c_in, c_out, use_proj=True)
    x1 = jax.random.normal(k_x1, (n, c_in, hh, ww), jnp.float32)
    ref1 = resblock_reference(x1, params1, c_in=c_in, c_out=c_out)

    # exact-semantics path (f32 MXU operands): tight tolerance
    out1_f32 = jax.block_until_ready(
        resblock_forward(x1, params1, c_in=c_in, c_out=c_out, mxu_bf16=False))
    assert out1_f32.shape == (n, c_out, hh, ww)
    assert bool(jnp.all(jnp.isfinite(out1_f32)))
    assert bool(jnp.allclose(out1_f32, ref1, atol=2e-3, rtol=2e-3)), \
        float(jnp.max(jnp.abs(out1_f32 - ref1)))

    # production path (bf16 MXU operands, f32 stats/epilogue): loose tolerance
    out1_bf16 = jax.block_until_ready(
        resblock_forward(x1, params1, c_in=c_in, c_out=c_out, mxu_bf16=True))
    assert out1_bf16.shape == (n, c_out, hh, ww)
    assert bool(jnp.all(jnp.isfinite(out1_bf16)))
    assert bool(jnp.allclose(out1_bf16, ref1, atol=5e-2, rtol=5e-2)), \
        float(jnp.max(jnp.abs(out1_bf16 - ref1)))

    # --- case 2: c_in == c_out (identity skip, no wid/bid), x = (2, 8, 8, 8) ---
    c2 = 8
    n2, hh2, ww2 = 2, 8, 8
    params2 = _make_params(k_p2, c2, c2, use_proj=False)
    x2 = jax.random.normal(k_x2, (n2, c2, hh2, ww2), jnp.float32)
    ref2 = resblock_reference(x2, params2, c_in=c2, c_out=c2)

    out2_f32 = jax.block_until_ready(
        resblock_forward(x2, params2, c_in=c2, c_out=c2, mxu_bf16=False))
    assert out2_f32.shape == (n2, c2, hh2, ww2)
    assert bool(jnp.all(jnp.isfinite(out2_f32)))
    assert bool(jnp.allclose(out2_f32, ref2, atol=2e-3, rtol=2e-3)), \
        float(jnp.max(jnp.abs(out2_f32 - ref2)))

    out2_bf16 = jax.block_until_ready(
        resblock_forward(x2, params2, c_in=c2, c_out=c2, mxu_bf16=True))
    assert out2_bf16.shape == (n2, c2, hh2, ww2)
    assert bool(jnp.all(jnp.isfinite(out2_bf16)))
    assert bool(jnp.allclose(out2_bf16, ref2, atol=5e-2, rtol=5e-2)), \
        float(jnp.max(jnp.abs(out2_bf16 - ref2)))

    print("KERNEL_OK")
</pallas_src>

<mosaic_0001>
module attributes {stable_mosaic.version = 11 : i64} {
  func.func @kernel(%arg0: memref<32x64xf32, #tpu.memory_space<vmem>>, %arg1: memref<32x32xf32, #tpu.memory_space<vmem>>, %arg2: memref<32x32xf32, #tpu.memory_space<vmem>>, %arg3: memref<3x64x128xf32, #tpu.memory_space<vmem>>, %arg4: memref<3x128x128xf32, #tpu.memory_space<vmem>>, %arg5: memref<128x128xf32, #tpu.memory_space<vmem>>, %arg6: memref<1x128xf32, #tpu.memory_space<vmem>>, %arg7: memref<1x128xf32, #tpu.memory_space<vmem>>, %arg8: memref<1x128xf32, #tpu.memory_space<vmem>>, %arg9: memref<1x128xf32, #tpu.memory_space<vmem>>, %arg10: memref<64x128xf32, #tpu.memory_space<vmem>>, %arg11: memref<32x128xf32, #tpu.memory_space<vmem>>) attributes {dimension_semantics = [], scalar_prefetch = 0 : i64, scratch_operands = 0 : i64, tpu.core_type = #tpu.core_type<tc>} {
    %c0 = arith.constant 0 : index
    %c0_0 = arith.constant 0 : index
    %0 = vector.load %arg0[%c0, %c0_0] : memref<32x64xf32, #tpu.memory_space<vmem>>, vector<32x64xf32>
    %c0_1 = arith.constant 0 : index
    %c0_2 = arith.constant 0 : index
    %1 = vector.load %arg1[%c0_1, %c0_2] : memref<32x32xf32, #tpu.memory_space<vmem>>, vector<32x32xf32>
    %c0_3 = arith.constant 0 : index
    %c0_4 = arith.constant 0 : index
    %2 = vector.load %arg2[%c0_3, %c0_4] : memref<32x32xf32, #tpu.memory_space<vmem>>, vector<32x32xf32>
    %c0_5 = arith.constant 0 : index
    %c0_6 = arith.constant 0 : index
    %3 = vector.load %arg5[%c0_5, %c0_6] : memref<128x128xf32, #tpu.memory_space<vmem>>, vector<128x128xf32>
    %cst = arith.constant dense<0.000000e+00> : vector<32x64xf32>
    %4 = tpu.matmul %1, %0, %cst {dimension_numbers = #tpu.dot_dimension_numbers<[1], [0], [0], [1], [0, 0, 1, 1], [], []>} : vector<32x32xf32>, vector<32x64xf32>, vector<32x64xf32> -> vector<32x64xf32>
    %cst_7 = arith.constant dense<0.000000e+00> : vector<32x64xf32>
    %5 = tpu.matmul %2, %0, %cst_7 {dimension_numbers = #tpu.dot_dimension_numbers<[1], [0], [0], [1], [0, 0, 1, 1], [], []>} : vector<32x32xf32>, vector<32x64xf32>, vector<32x64xf32> -> vector<32x64xf32>
    %c0_8 = arith.constant 0 : index
    %c0_9 = arith.constant 0 : index
    %c0_10 = arith.constant 0 : index
    %6 = vector.load %arg3[%c0_8, %c0_9, %c0_10] : memref<3x64x128xf32, #tpu.memory_space<vmem>>, vector<1x64x128xf32>
    %7 = vector.shape_cast %6 : vector<1x64x128xf32> to vector<64x128xf32>
    %cst_11 = arith.constant dense<0.000000e+00> : vector<32x128xf32>
    %8 = tpu.matmul %4, %7, %cst_11 {dimension_numbers = #tpu.dot_dimension_numbers<[1], [0], [0], [1], [0, 0, 1, 1], [], []>} : vector<32x64xf32>, vector<64x128xf32>, vector<32x128xf32> -> vector<32x128xf32>
    %c1 = arith.constant 1 : index
    %c0_12 = arith.constant 0 : index
    %c0_13 = arith.constant 0 : index
    %9 = vector.load %arg3[%c1, %c0_12, %c0_13] : memref<3x64x128xf32, #tpu.memory_space<vmem>>, vector<1x64x128xf32>
    %10 = vector.shape_cast %9 : vector<1x64x128xf32> to vector<64x128xf32>
    %cst_14 = arith.constant dense<0.000000e+00> : vector<32x128xf32>
    %11 = tpu.matmul %0, %10, %cst_14 {dimension_numbers = #tpu.dot_dimension_numbers<[1], [0], [0], [1], [0, 0, 1, 1], [], []>} : vector<32x64xf32>, vector<64x128xf32>, vector<32x128xf32> -> vector<32x128xf32>
    %12 = arith.addf %8, %11 : vector<32x128xf32>
    %c2 = arith.constant 2 : index
    %c0_15 = arith.constant 0 : index
    %c0_16 = arith.constant 0 : index
    %13 = vector.load %arg3[%c2, %c0_15, %c0_16] : memref<3x64x128xf32, #tpu.memory_space<vmem>>, vector<1x64x128xf32>
    %14 = vector.shape_cast %13 : vector<1x64x128xf32> to vector<64x128xf32>
    %cst_17 = arith.constant dense<0.000000e+00> : vector<32x128xf32>
    %15 = tpu.matmul %5, %14, %cst_17 {dimension_numbers = #tpu.dot_dimension_numbers<[1], [0], [0], [1], [0, 0, 1, 1], [], []>} : vector<32x64xf32>, vector<64x128xf32>, vector<32x128xf32> -> vector<32x128xf32>
    %16 = arith.addf %12, %15 : vector<32x128xf32>
    %c0_18 = arith.constant 0 : index
    %c0_19 = arith.constant 0 : index
    %17 = vector.load %arg6[%c0_18, %c0_19] : memref<1x128xf32, #tpu.memory_space<vmem>>, vector<1x128xf32>
    %c0_20 = arith.constant 0 : index
    %c0_21 = arith.constant 0 : index
    %18 = vector.load %arg7[%c0_20, %c0_21] : memref<1x128xf32, #tpu.memory_space<vmem>>, vector<1x128xf32>
    %cst_22 = arith.constant dense<0.000000e+00> : vector<128xf32>
    %19 = vector.multi_reduction <add>, %16, %cst_22 [0] : vector<32x128xf32> to vector<128xf32>
    %20 = vector.shape_cast %19 : vector<128xf32> to vector<1x128xf32>
    %cst_23 = arith.constant dense<0.000000e+00> : vector<1x128xf32>
    %21 = tpu.matmul %20, %3, %cst_23 {dimension_numbers = #tpu.dot_dimension_numbers<[1], [0], [0], [1], [0, 0, 1, 1], [], []>} : vector<1x128xf32>, vector<128x128xf32>, vector<1x128xf32> -> vector<1x128xf32>
    %22 = vector.broadcast %21 : vector<1x128xf32> to vector<32x128xf32>
    %23 = arith.subf %16, %22 : vector<32x128xf32>
    %24 = arith.mulf %23, %23 : vector<32x128xf32>
    %cst_24 = arith.constant dense<0.000000e+00> : vector<128xf32>
    %25 = vector.multi_reduction <add>, %24, %cst_24 [0] : vector<32x128xf32> to vector<128xf32>
    %26 = vector.shape_cast %25 : vector<128xf32> to vector<1x128xf32>
    %cst_25 = arith.constant dense<0.000000e+00> : vector<1x128xf32>
    %27 = tpu.matmul %26, %3, %cst_25 {dimension_numbers = #tpu.dot_dimension_numbers<[1], [0], [0], [1], [0, 0, 1, 1], [], []>} : vector<1x128xf32>, vector<128x128xf32>, vector<1x128xf32> -> vector<1x128xf32>
    %cst_26 = arith.constant 9.99999974E-6 : f32
    %28 = vector.broadcast %cst_26 : f32 to vector<1x128xf32>
    %29 = arith.addf %27, %28 : vector<1x128xf32>
    %30 = math.rsqrt %29 : vector<1x128xf32>
    %31 = arith.mulf %17, %30 : vector<1x128xf32>
    %32 = vector.broadcast %31 : vector<1x128xf32> to vector<32x128xf32>
    %33 = arith.mulf %23, %32 : vector<32x128xf32>
    %34 = vector.broadcast %18 : vector<1x128xf32> to vector<32x128xf32>
    %35 = arith.addf %33, %34 : vector<32x128xf32>
    %cst_27 = arith.constant 0.000000e+00 : f32
    %36 = vector.broadcast %cst_27 : f32 to vector<32x128xf32>
    %37 = arith.maximumf %35, %36 : vector<32x128xf32>
    %cst_28 = arith.constant dense<0.000000e+00> : vector<32x128xf32>
    %38 = tpu.matmul %1, %37, %cst_28 {dimension_numbers = #tpu.dot_dimension_numbers<[1], [0], [0], [1], [0, 0, 1, 1], [], []>} : vector<32x32xf32>, vector<32x128xf32>, vector<32x128xf32> -> vector<32x128xf32>
    %cst_29 = arith.constant dense<0.000000e+00> : vector<32x128xf32>
    %39 = tpu.matmul %2, %37, %cst_29 {dimension_numbers = #tpu.dot_dimension_numbers<[1], [0], [0], [1], [0, 0, 1, 1], [], []>} : vector<32x32xf32>, vector<32x128xf32>, vector<32x128xf32> -> vector<32x128xf32>
    %c0_30 = arith.constant 0 : index
    %c0_31 = arith.constant 0 : index
    %c0_32 = arith.constant 0 : index
    %40 = vector.load %arg4[%c0_30, %c0_31, %c0_32] : memref<3x128x128xf32, #tpu.memory_space<vmem>>, vector<1x128x128xf32>
    %41 = vector.shape_cast %40 : vector<1x128x128xf32> to vector<128x128xf32>
    %cst_33 = arith.constant dense<0.000000e+00> : vector<32x128xf32>
    %42 = tpu.matmul %38, %41, %cst_33 {dimension_numbers = #tpu.dot_dimension_numbers<[1], [0], [0], [1], [0, 0, 1, 1], [], []>} : vector<32x128xf32>, vector<128x128xf32>, vector<32x128xf32> -> vector<32x128xf32>
    %c1_34 = arith.constant 1 : index
    %c0_35 = arith.constant 0 : index
    %c0_36 = arith.constant 0 : index
    %43 = vector.load %arg4[%c1_34, %c0_35, %c0_36] : memref<3x128x128xf32, #tpu.memory_space<vmem>>, vector<1x128x128xf32>
    %44 = vector.shape_cast %43 : vector<1x128x128xf32> to vector<128x128xf32>
    %cst_37 = arith.constant dense<0.000000e+00> : vector<32x128xf32>
    %45 = tpu.matmul %37, %44, %cst_37 {dimension_numbers = #tpu.dot_dimension_numbers<[1], [0], [0], [1], [0, 0, 1, 1], [], []>} : vector<32x128xf32>, vector<128x128xf32>, vector<32x128xf32> -> vector<32x128xf32>
    %46 = arith.addf %42, %45 : vector<32x128xf32>
    %c2_38 = arith.constant 2 : index
    %c0_39 = arith.constant 0 : index
    %c0_40 = arith.constant 0 : index
    %47 = vector.load %arg4[%c2_38, %c0_39, %c0_40] : memref<3x128x128xf32, #tpu.memory_space<vmem>>, vector<1x128x128xf32>
    %48 = vector.shape_cast %47 : vector<1x128x128xf32> to vector<128x128xf32>
    %cst_41 = arith.constant dense<0.000000e+00> : vector<32x128xf32>
    %49 = tpu.matmul %39, %48, %cst_41 {dimension_numbers = #tpu.dot_dimension_numbers<[1], [0], [0], [1], [0, 0, 1, 1], [], []>} : vector<32x128xf32>, vector<128x128xf32>, vector<32x128xf32> -> vector<32x128xf32>
    %50 = arith.addf %46, %49 : vector<32x128xf32>
    %c0_42 = arith.constant 0 : index
    %c0_43 = arith.constant 0 : index
    %51 = vector.load %arg8[%c0_42, %c0_43] : memref<1x128xf32, #tpu.memory_space<vmem>>, vector<1x128xf32>
    %c0_44 = arith.constant 0 : index
    %c0_45 = arith.constant 0 : index
    %52 = vector.load %arg9[%c0_44, %c0_45] : memref<1x128xf32, #tpu.memory_space<vmem>>, vector<1x128xf32>
    %cst_46 = arith.constant dense<0.000000e+00> : vector<128xf32>
    %53 = vector.multi_reduction <add>, %50, %cst_46 [0] : vector<32x128xf32> to vector<128xf32>
    %54 = vector.shape_cast %53 : vector<128xf32> to vector<1x128xf32>
    %cst_47 = arith.constant dense<0.000000e+00> : vector<1x128xf32>
    %55 = tpu.matmul %54, %3, %cst_47 {dimension_numbers = #tpu.dot_dimension_numbers<[1], [0], [0], [1], [0, 0, 1, 1], [], []>} : vector<1x128xf32>, vector<128x128xf32>, vector<1x128xf32> -> vector<1x128xf32>
    %56 = vector.broadcast %55 : vector<1x128xf32> to vector<32x128xf32>
    %57 = arith.subf %50, %56 : vector<32x128xf32>
    %58 = arith.mulf %57, %57 : vector<32x128xf32>
    %cst_48 = arith.constant dense<0.000000e+00> : vector<128xf32>
    %59 = vector.multi_reduction <add>, %58, %cst_48 [0] : vector<32x128xf32> to vector<128xf32>
    %60 = vector.shape_cast %59 : vector<128xf32> to vector<1x128xf32>
    %cst_49 = arith.constant dense<0.000000e+00> : vector<1x128xf32>
    %61 = tpu.matmul %60, %3, %cst_49 {dimension_numbers = #tpu.dot_dimension_numbers<[1], [0], [0], [1], [0, 0, 1, 1], [], []>} : vector<1x128xf32>, vector<128x128xf32>, vector<1x128xf32> -> vector<1x128xf32>
    %cst_50 = arith.constant 9.99999974E-6 : f32
    %62 = vector.broadcast %cst_50 : f32 to vector<1x128xf32>
    %63 = arith.addf %61, %62 : vector<1x128xf32>
    %64 = math.rsqrt %63 : vector<1x128xf32>
    %65 = arith.mulf %51, %64 : vector<1x128xf32>
    %66 = vector.broadcast %65 : vector<1x128xf32> to vector<32x128xf32>
    %67 = arith.mulf %57, %66 : vector<32x128xf32>
    %68 = vector.broadcast %52 : vector<1x128xf32> to vector<32x128xf32>
    %69 = arith.addf %67, %68 : vector<32x128xf32>
    %c0_51 = arith.constant 0 : index
    %c0_52 = arith.constant 0 : index
    %70 = vector.load %arg10[%c0_51, %c0_52] : memref<64x128xf32, #tpu.memory_space<vmem>>, vector<64x128xf32>
    %cst_53 = arith.constant dense<0.000000e+00> : vector<32x128xf32>
    %71 = tpu.matmul %0, %70, %cst_53 {dimension_numbers = #tpu.dot_dimension_numbers<[1], [0], [0], [1], [0, 0, 1, 1], [], []>} : vector<32x64xf32>, vector<64x128xf32>, vector<32x128xf32> -> vector<32x128xf32>
    %72 = arith.addf %69, %71 : vector<32x128xf32>
    %cst_54 = arith.constant 0.000000e+00 : f32
    %73 = vector.broadcast %cst_54 : f32 to vector<32x128xf32>
    %74 = arith.maximumf %72, %73 : vector<32x128xf32>
    %c0_55 = arith.constant 0 : index
    %c0_56 = arith.constant 0 : index
    %75 = vector.load %arg11[%c0_55, %c0_56] : memref<32x128xf32, #tpu.memory_space<vmem>>, vector<32x128xf32>
    tpu.vector_store %arg11[%c0_55, %c0_56], %74 {strides = array<i32>} : memref<32x128xf32, #tpu.memory_space<vmem>>, vector<32x128xf32>,
    return
  }
}

</mosaic_0001>

<bundles_post_ra>
// kernel: tpu_custom_call.1
= control target key start
LH: loop header
LB: loop body
LE: loop exit
PB: predicated region body
PF: predicated region fallthrough
CT: control target
= control target key end

     0   :  { %16 = vsyncpa [#allocation3], 0  ;;  %s2916_s0 = inlined_call_operand.hbm [shape: f32[32,64], index: 0, kind: input, shape index: {}]   ;;  %s2917_s1 = inlined_call_operand.hbm [shape: f32[32,32], index: 1, kind: input, shape index: {}]   ;;  %s2918_s2 = inlined_call_operand.hbm [shape: f32[32,32], index: 2, kind: input, shape index: {}]   ;;  %s2919_s3 = inlined_call_operand.hbm [shape: f32[3,64,128], index: 3, kind: input, shape index: {}]   ;;  %s2920_s4 = inlined_call_operand.hbm [shape: f32[3,128,128], index: 4, kind: input, shape index: {}]   ;;  %s2921_s5 = inlined_call_operand.hbm [shape: f32[128,128], index: 5, kind: input, shape index: {}]   ;;  %s2922_s6 = inlined_call_operand.vmem [shape: f32[1,128], index: 6, kind: input, shape index: {}]   ;;  %s2923_s7 = inlined_call_operand.vmem [shape: f32[1,128], index: 7, kind: input, shape index: {}]   ;;  %s2924_s8 = inlined_call_operand.vmem [shape: f32[1,128], index: 8, kind: input, shape index: {}]   ;;  %s2925_s9 = inlined_call_operand.vmem [shape: f32[1,128], index: 9, kind: input, shape index: {}]   ;;  %s2926_s10 = inlined_call_operand.hbm [shape: f32[64,128], index: 10, kind: input, shape index: {}]   ;;  %s2927_s11 = inlined_call_operand.hbm [shape: f32[32,128], index: 11, kind: output, shape index: {}]  }
   0x1   :  { %17 = vsyncpa [#allocation6], 0 }
   0x2   :  { %18 = vsyncpa [#allocation9], 0 }
   0x3   :  { %19 = vsyncpa [#allocation12], 0 }
   0x4   :  { %20 = vsyncpa [#allocation4], 0  ;;  %s2505_s17 = smov [#allocation5]   ;;  %s2506_s19 = smov [#allocation8]  }
   0x5   :  { %s38_s18 = sshll.u32 %s2505_s17, 4  ;;  %s62_s20 = sshll.u32 %s2506_s19, 4  ;;  %s39_s18 = int_to_ptr.vmem [resolvable:$true] %s38_s18  ;;  %s63_s20 = int_to_ptr.vmem [resolvable:$true] %s62_s20 }
   0x6   :  { %s2343_s21 = scalar_lea.vmem %s39_s18, 512  ;;  %p2348_p1 = scmp.lt.s32.totalorder %s39_s18, %s39_s18 }
   0x7   :  { %p2344_p0 = scmp.ne.s32.totalorder %s39_s18, %s2343_s21  ;;  %p2349_p2 = scmp.lt.s32.totalorder %s2343_s21, %s2343_s21 }
   0x9   :  { %p2350_p3 = por %p2349_p2, %p2348_p1 }
   0xb   :  { %p2351_p4 = pnand %p2350_p3, %p2344_p0 }
   0xd   :  { %2354 = shalt.err (!%p2351_p4)
}
   0xe   :  { %s2507_s22 = smov 128   ;;  %s2508_s23 = smov 8  }
   0xf   :  { %44 = dma.hbm_to_vmem [thread:$0]  %s2917_s1, 512, %s39_s18, [#allocation6], %s2507_s22, %s2507_s22, %s2508_s23  }
  0x10   :  { %s2363_s26 = scalar_lea.vmem %s63_s20, 3072  ;;  %p2368_p6 = scmp.lt.s32.totalorder %s63_s20, %s63_s20 }
  0x11   :  { %p2364_p5 = scmp.ne.s32.totalorder %s63_s20, %s2363_s26  ;;  %p2369_p7 = scmp.lt.s32.totalorder %s2363_s26, %s2363_s26 }
  0x13   :  { %p2370_p8 = por %p2369_p7, %p2368_p6 }
  0x15   :  { %p2371_p9 = pnand %p2370_p8, %p2364_p5 }
  0x17   :  { %2374 = shalt.err (!%p2371_p9)
}
  0x18   :  { %68 = dma.hbm_to_vmem [thread:$0]  %s2919_s3, 3072, %s63_s20, [#allocation9], %s2507_s22, %s2507_s22, %s2508_s23  }
  0x19   :  { %s2509_s29 = smov [#allocation11]   ;;  %s2510_s12 = smov [#allocation2]  }
  0x1a   :  { %s86_s30 = sshll.u32 %s2509_s29, 4  ;;  %s26_s13 = sshll.u32 %s2510_s12, 4  ;;  %s87_s30 = int_to_ptr.vmem [resolvable:$true] %s86_s30  ;;  %s27_s13 = int_to_ptr.vmem [resolvable:$true] %s26_s13 }
  0x1b   :  { %s2383_s1 = scalar_lea.vmem %s87_s30, 2048  ;;  %p2388_p11 = scmp.lt.s32.totalorder %s87_s30, %s87_s30 }
  0x1c   :  { %p2384_p10 = scmp.ne.s32.totalorder %s87_s30, %s2383_s1  ;;  %p2389_p12 = scmp.lt.s32.totalorder %s2383_s1, %s2383_s1 }
  0x1e   :  { %p2390_p13 = por %p2389_p12, %p2388_p11 }
  0x20   :  { %p2391_p0 = pnand %p2390_p13, %p2384_p10 }
  0x22   :  { %2394 = shalt.err (!%p2391_p0)
}
  0x23   :  { %92 = dma.hbm_to_vmem [thread:$0]  %s2921_s5, 2048, %s87_s30, [#allocation12], %s2507_s22, %s2507_s22, %s2508_s23  }
  0x24   :  { %s2403_s3 = scalar_lea.vmem %s27_s13, 512  ;;  %p2408_p2 = scmp.lt.s32.totalorder %s27_s13, %s27_s13 }
  0x25   :  { %p2404_p1 = scmp.ne.s32.totalorder %s27_s13, %s2403_s3  ;;  %p2409_p3 = scmp.lt.s32.totalorder %s2403_s3, %s2403_s3 }
  0x27   :  { %p2410_p4 = por %p2409_p3, %p2408_p2 }
  0x29   :  { %p2411_p5 = pnand %p2410_p4, %p2404_p1 }
  0x2b   :  { %2414 = shalt.err (!%p2411_p5)
}
  0x2c   :  { %32 = dma.hbm_to_vmem [thread:$0]  %s2916_s0, 512, %s27_s13, [#allocation3], %s2507_s22, %s2507_s22, %s2508_s23  }
  0x2d   :  { %s2511_s18 = smov [#allocation7]   ;;  %s2512_s20 = smov [#allocation10]  }
  0x2e   :  { %s50_s19 = sshll.u32 %s2511_s18, 4  ;;  %s74_s21 = sshll.u32 %s2512_s20, 4  ;;  %s51_s19 = int_to_ptr.vmem [resolvable:$true] %s50_s19  ;;  %s75_s21 = int_to_ptr.vmem [resolvable:$true] %s74_s21 }
  0x2f   :  { %s2423_s5 = scalar_lea.vmem %s51_s19, 512  ;;  %p2428_p7 = scmp.lt.s32.totalorder %s51_s19, %s51_s19 }
  0x30   :  { %p2424_p6 = scmp.ne.s32.totalorder %s51_s19, %s2423_s5  ;;  %p2429_p8 = scmp.lt.s32.totalorder %s2423_s5, %s2423_s5 }
  0x32   :  { %p2430_p9 = por %p2429_p8, %p2428_p7 }
  0x34   :  { %p2431_p10 = pnand %p2430_p9, %p2424_p6 }
  0x36   :  { %2434 = shalt.err (!%p2431_p10)
}
  0x37   :  { %56 = dma.hbm_to_vmem [thread:$0]  %s2918_s2, 512, %s51_s19, [#allocation6], %s2507_s22, %s2507_s22, %s2508_s23  }
  0x38   :  { %s2443_s0 = scalar_lea.vmem %s75_s21, 6144  ;;  %p2448_p12 = scmp.lt.s32.totalorder %s75_s21, %s75_s21 }
  0x39   :  { %p2444_p11 = scmp.ne.s32.totalorder %s75_s21, %s2443_s0  ;;  %p2449_p13 = scmp.lt.s32.totalorder %s2443_s0, %s2443_s0 }
  0x3b   :  { %p2450_p0 = por %p2449_p13, %p2448_p12 }
  0x3d   :  { %p2451_p1 = pnand %p2450_p0, %p2444_p11 }
  0x3f   :  { %2454 = shalt.err (!%p2451_p1)
}
  0x40   :  { %80 = dma.hbm_to_vmem [thread:$0]  %s2920_s4, 6144, %s75_s21, [#allocation9], %s2507_s22, %s2507_s22, %s2508_s23  }
  0x41   :  { %s2513_s28 = smov [#allocation13]  }
  0x42   :  { %s106_s29 = sshll.u32 %s2513_s28, 4  ;;  %s107_s29 = int_to_ptr.vmem [resolvable:$true] %s106_s29 }
  0x43   :  { %s2463_s30 = scalar_lea.vmem %s107_s29, 1024  ;;  %p2468_p3 = scmp.lt.s32.totalorder %s107_s29, %s107_s29 }
  0x44   :  { %p2464_p2 = scmp.ne.s32.totalorder %s107_s29, %s2463_s30  ;;  %p2469_p4 = scmp.lt.s32.totalorder %s2463_s30, %s2463_s30 }
  0x46   :  { %p2470_p5 = por %p2469_p4, %p2468_p3 }
  0x48   :  { %p2471_p6 = pnand %p2470_p5, %p2464_p2 }
  0x4a   :  { %2474 = shalt.err (!%p2471_p6)
}
  0x4b   :  { %112 = dma.hbm_to_vmem [thread:$0]  %s2926_s10, 1024, %s107_s29, [#allocation12], %s2507_s22, %s2507_s22, %s2508_s23  }
  0x4c   :  { %2495 = dma.done.wait [#allocation3], 512  }
  0x4d   :  { %2496 = vsyncadd [#allocation3], 4294966784 }
  0x4e   :  { %2497 = dma.done.wait [#allocation6], 1024  }
  0x4f   :  { %2498 = vsyncadd [#allocation6], 4294966272 }
  0x50   :  { %2499 = dma.done.wait [#allocation9], 9216  }
  0x51   :  { %2500 = vsyncadd [#allocation9], 4294958080 }
  0x52   :  { %2501 = dma.done.wait [#allocation12], 3072  }
  0x53   :  { %2502 = vsyncadd [#allocation12], 4294964224  ;;  %vm162_vm0 = vcmask 261120   ;;  %v2619_v0 = vld [vmem:[#allocation2 + $0x18] sm:$0xff]  ;;  %v2621_v1 = vld [vmem:[#allocation2 + $0x10] sm:$0xff]  ;;  %vm374_vm1 = vcmask 523264  }
  0x54   :  { %1917 = vmatprep.subr.mxu1 %v2619_v0  ;;  %v2624_v2 = vld [vmem:[#allocation5] sm:$0xff]  ;;  %v2627_v3 = vld [vmem:[#allocation2 + $0x8] sm:$0xff]  ;;  %v373_v5 = vld [vmem:[#allocation8 + $0x78] sm:$0xff]  ;;  %v2514_v44 = vmov 0.0   ;;  %vm2515_vm2 = vmmov 0  }
  0x55   :  { %1918 = vmatpush3.msra.mxu1 %v2619_v0  ;;  %v134_v4 = vld [vmem:[#allocation2] sm:$0xff]  ;;  %1925 = vmatprep.mubr.msk.f32.mxu1 %vm162_vm0, %v2624_v2  ;;  %v372_v6 = vld [vmem:[#allocation8 + $0x70] sm:$0xff]  ;;  %v2636_v7 = vld [vmem:[#allocation5 + $0x8] sm:$0xff] }
  0x56   :  { %1919 = vmatprep.subr.mxu1 %v2621_v1  ;;  %1961 = vmatprep.mubr.msk.f32.mxu0 %vm374_vm1, %v134_v4  ;;  %v2638_v8 = vld [vmem:[#allocation5 + $0x10] sm:$0xff]  ;;  %v371_v9 = vld [vmem:[#allocation8 + $0x68] sm:$0xff]  ;;  %v2646_v10 = vld [vmem:[#allocation5 + $0x18] sm:$0xff] }
  0x57   :  { %1920 = vmatpush3.msra.mxu1 %v2621_v1  ;;  %1945 = vmatprep.subr.mxu0 %v373_v5  ;;  %v2649_v11 = vld [vmem:[#allocation7] sm:$0xff]  ;;  %v2658_v13 = vld [vmem:[#allocation7 + $0x8] sm:$0xff]  ;;  %v369_v14 = vld [vmem:[#allocation8 + $0x58] sm:$0xff] }
  0x58   :  { %1921 = vmatprep.subr.mxu1 %v2627_v3  ;;  %1946 = vmatpush3.msra.mxu0 %v373_v5  ;;  %v370_v12 = vld [vmem:[#allocation8 + $0x60] sm:$0xff]  ;;  %v2660_v15 = vld [vmem:[#allocation7 + $0x10] sm:$0xff]  ;;  %v364_v16 = vld [vmem:[#allocation8 + $0x38] sm:$0xff] }
  0x59   :  { %1922 = vmatpush3.msra.mxu1 %v2627_v3  ;;  %1947 = vmatprep.subr.mxu0 %v372_v6  ;;  %v368_v17 = vld [vmem:[#allocation8 + $0x50] sm:$0xff]  ;;  %v2666_v18 = vld [vmem:[#allocation7 + $0x18] sm:$0xff]  ;;  %v367_v20 = vld [vmem:[#allocation8 + $0x48] sm:$0xff] }
  0x5a   :  { %1923 = vmatprep.subr.mxu1 %v134_v4  ;;  %1948 = vmatpush3.msra.mxu0 %v372_v6  ;;  %v363_v19 = vld [vmem:[#allocation8 + $0x30] sm:$0xff]  ;;  %v362_v21 = vld [vmem:[#allocation8 + $0x28] sm:$0xff]  ;;  %v366_v22 = vld [vmem:[#allocation8 + $0x40] sm:$0xff] }
  0x5b   :  { %1924 = vmatpush3.msra.mxu1 %v134_v4  ;;  %1949 = vmatprep.subr.mxu0 %v371_v9  ;;  %v361_v23 = vld [vmem:[#allocation8 + $0x20] sm:$0xff]  ;;  %v360_v24 = vld [vmem:[#allocation8 + $0x18] sm:$0xff]  ;;  %v359_v26 = vld [vmem:[#allocation8 + $0x10] sm:$0xff] }
  0x5c   :  { %1926 = vmatmul.mubr.msk.f32.vlgmr.msra.gmra.mxu1 %vm162_vm0, %v2636_v7  ;;  %1931 = vmatprep.subr.mxu1 %v2619_v0  ;;  %v577_v25 = vld [vmem:[#allocation8 + $0xb8] sm:$0xff]  ;;  %v576_v27 = vld [vmem:[#allocation8 + $0xb0] sm:$0xff]  ;;  %v358_v28 = vld [vmem:[#allocation8 + $0x8] sm:$0xff] }
  0x5d   :  { %1932 = vmatpush3.msra.mxu1 %v2619_v0  ;;  %1928 = vmatprep.mubr.msk.f32.mxu1 %vm162_vm0, %v2638_v8  ;;  %v575_v29 = vld [vmem:[#allocation8 + $0xa8] sm:$0xff]  ;;  %v357_v30 = vld [vmem:[#allocation8] sm:$0xff]  ;;  %v573_v32 = vld [vmem:[#allocation8 + $0x98] sm:$0xff] }
  0x5e   :  { %1933 = vmatprep.subr.mxu1 %v2621_v1  ;;  %1950 = vmatpush3.msra.mxu0 %v371_v9  ;;  %v574_v31 = vld [vmem:[#allocation8 + $0xa0] sm:$0xff]  ;;  %v572_v33 = vld [vmem:[#allocation8 + $0x90] sm:$0xff]  ;;  %v571_v34 = vld [vmem:[#allocation8 + $0x88] sm:$0xff] }
  0x5f   :  { %1934 = vmatpush3.msra.mxu1 %v2621_v1  ;;  %1951 = vmatprep.subr.mxu0 %v370_v12  ;;  %v570_v35 = vld [vmem:[#allocation8 + $0x80] sm:$0xff]  ;;  %v2685_v45 = vld [vmem:[#allocation11 + $0x78] sm:$0xff]  ;;  %v2691_v46 = vld [vmem:[#allocation11 + $0x70] sm:$0xff] }
  0x60   :  { %1929 = vmatmul.mubr.msk.f32.gmra.mxu1 %vm162_vm0, %v2646_v10  ;;  %1935 = vmatprep.subr.mxu1 %v2627_v3  ;;  %v2697_v47 = vld [vmem:[#allocation11 + $0x68] sm:$0xff]  ;;  %v2703_v48 = vld [vmem:[#allocation11 + $0x60] sm:$0xff]  ;;  %v2709_v49 = vld [vmem:[#allocation11 + $0x58] sm:$0xff] }
  0x61   :  { %1936 = vmatpush3.msra.mxu1 %v2627_v3  ;;  %1939 = vmatprep.mubr.msk.f32.mxu1 %vm162_vm0, %v2649_v11  ;;  %v2715_v50 = vld [vmem:[#allocation11 + $0x50] sm:$0xff]  ;;  %v2721_v51 = vld [vmem:[#allocation11 + $0x48] sm:$0xff]  ;;  %v2727_v52 = vld [vmem:[#allocation11 + $0x40] sm:$0xff] }
  0x62   :  { %1937 = vmatprep.subr.mxu1 %v134_v4  ;;  %1952 = vmatpush3.msra.mxu0 %v370_v12  ;;  %v2733_v53 = vld [vmem:[#allocation11 + $0x38] sm:$0xff]  ;;  %v2739_v54 = vld [vmem:[#allocation11 + $0x30] sm:$0xff]  ;;  %v2745_v55 = vld [vmem:[#allocation11 + $0x28] sm:$0xff] }
  0x63   :  { %1938 = vmatpush3.msra.mxu1 %v134_v4  ;;  %1953 = vmatprep.subr.mxu0 %v369_v14  ;;  %v2751_v56 = vld [vmem:[#allocation11 + $0x20] sm:$0xff]  ;;  %v2757_v57 = vld [vmem:[#allocation11 + $0x18] sm:$0xff]  ;;  %v2763_v58 = vld [vmem:[#allocation11 + $0x10] sm:$0xff] }
  0x64   :  { %1940 = vmatmul.mubr.msk.f32.vlgmr.msra.gmra.mxu1 %vm162_vm0, %v2658_v13  ;;  %1954 = vmatpush3.msra.mxu0 %v369_v14  ;;  %v2769_v59 = vld [vmem:[#allocation11 + $0x8] sm:$0xff]  ;;  %v2775_v60 = vld [vmem:[#allocation11] sm:$0xff] }
  0x65   :  { %1942 = vmatprep.mubr.msk.f32.mxu1 %vm162_vm0, %v2660_v15  ;;  %1967 = vmatprep.subr.mxu1 %v364_v16 }
  0x66   :  { %1955 = vmatprep.subr.mxu0 %v368_v17  ;;  %1968 = vmatpush3.msra.mxu1 %v364_v16 }
  0x67   :  { %1956 = vmatpush3.msra.mxu0 %v368_v17  ;;  %1969 = vmatprep.subr.mxu1 %v363_v19 }
  0x68   :  { %1943 = vmatmul.mubr.msk.f32.gmra.mxu1 %vm162_vm0, %v2666_v18  ;;  %1957 = vmatprep.subr.mxu0 %v367_v20 }
  0x69   :  { %1970 = vmatpush3.msra.mxu1 %v363_v19  ;;  %1958 = vmatpush3.msra.mxu0 %v367_v20 }
  0x6a   :  { %1971 = vmatprep.subr.mxu1 %v362_v21  ;;  %1959 = vmatprep.subr.mxu0 %v366_v22 }
  0x6b   :  { %1972 = vmatpush3.msra.mxu1 %v362_v21  ;;  %1960 = vmatpush3.msra.mxu0 %v366_v22 }
  0x6c   :  { %1973 = vmatprep.subr.mxu1 %v361_v23  ;;  %1962 = vmatmul.mubr.msk.f32.vlgmr.msra.gmra.mxu0 %vm374_vm1, %v2627_v3 }
  0x6d   :  { %1974 = vmatpush3.msra.mxu1 %v361_v23  ;;  %1989 = vmatprep.subr.mxu0 %v577_v25 }
  0x6e   :  { %1975 = vmatprep.subr.mxu1 %v360_v24  ;;  %1990 = vmatpush3.msra.mxu0 %v577_v25 }
  0x6f   :  { %1976 = vmatpush3.msra.mxu1 %v360_v24  ;;  %1991 = vmatprep.subr.mxu0 %v576_v27 }
  0x70   :  { %1977 = vmatprep.subr.mxu1 %v359_v26  ;;  %1992 = vmatpush3.msra.mxu0 %v576_v27 }
  0x71   :  { %1978 = vmatpush3.msra.mxu1 %v359_v26  ;;  %1964 = vmatprep.mubr.msk.f32.mxu0 %vm374_vm1, %v2621_v1 }
  0x72   :  { %1965 = vmatmul.mubr.msk.f32.gmra.mxu0 %vm374_vm1, %v2619_v0  ;;  %1979 = vmatprep.subr.mxu1 %v358_v28 }
  0x73   :  { %1993 = vmatprep.subr.mxu0 %v575_v29  ;;  %1980 = vmatpush3.msra.mxu1 %v358_v28 }
  0x74   :  { %1994 = vmatpush3.msra.mxu0 %v575_v29  ;;  %1981 = vmatprep.subr.mxu1 %v357_v30 }
  0x75   :  { %1995 = vmatprep.subr.mxu0 %v574_v31  ;;  %1982 = vmatpush3.msra.mxu1 %v357_v30 }
  0x76   :  { %1996 = vmatpush3.msra.mxu0 %v574_v31  ;;  %2011 = vmatprep.subr.mxu1 %v2514_v44 }
  0x77   :  { %1997 = vmatprep.subr.mxu0 %v573_v32 }
  0x78   :  { %1998 = vmatpush3.msra.mxu0 %v573_v32 }
  0x79   :  { %1999 = vmatprep.subr.mxu0 %v572_v33 }
  0x7a   :  { %2000 = vmatpush3.msra.mxu0 %v572_v33 }
  0x7b   :  { %2001 = vmatprep.subr.mxu0 %v571_v34 }
  0x7c   :  { %2002 = vmatpush3.msra.mxu0 %v571_v34  ;;  %v1079_v34 = vld [vmem:[#allocation10 + $0xf8] sm:$0xff] }
  0x7d   :  { %2003 = vmatprep.subr.mxu0 %v570_v35 }
  0x7e   :  { %2004 = vmatpush3.msra.mxu0 %v570_v35  ;;  %v760_v35 = vlaneseq }
  0x7f   :  { %2046 = vmatprep.subr.mxu0 %v2514_v44 }
 0x11c   :  { %v1927_v36 = vpop.f32.mrf.mxu1 }
 0x11e   :  { %v241_v37 = vpop.f32.mrf.mxu1 }
 0x11f   :  { %1983 = vmatprep.mubr.msk.f32.mxu1 %vm374_vm1, %v241_v37 }
 0x120   :  { %v1930_v38 = vpop.f32.mrf.mxu1  ;;  %1984 = vmatmul.mubr.msk.f32.vlgmr.msra.gmra.mxu1 %vm374_vm1, %v1927_v36  ;;  %v761_v36 = vshrl.u32 %v760_v35, 7 }
 0x121   :  { %2012 = vmatpush3.msra.mxu1 %v2685_v45 }
 0x122   :  { %v251_v39 = vpop.f32.mrf.mxu1  ;;  %2013 = vmatprep.subr.mxu1 %v2514_v44  ;;  %v2786_v37 = vsub.s32 0, %v761_v36 }
 0x123   :  { %1986 = vmatprep.mubr.msk.f32.mxu1 %vm374_vm1, %v251_v39  ;;  %2014 = vmatpush3.msra.mxu1 %v2691_v46 }
 0x124   :  { %v1941_v40 = vpop.f32.mrf.mxu1  ;;  %1987 = vmatmul.mubr.msk.f32.gmra.mxu1 %vm374_vm1, %v1930_v38  ;;  %2015 = vmatprep.subr.mxu1 %v2514_v44 }
 0x125   :  { %2016 = vmatpush3.msra.mxu1 %v2697_v47  ;;  %2043 = vmatprep.mubr.msk.f32.mxu1 %vm2515_vm2, %v2514_v44 }
 0x126   :  { %v338_v41 = vpop.f32.mrf.mxu1  ;;  %2017 = vmatprep.subr.mxu1 %v2514_v44 }
 0x127   :  { %2005 = vmatprep.mubr.msk.f32.mxu0 %vm374_vm1, %v338_v41  ;;  %2018 = vmatpush3.msra.mxu1 %v2703_v48 }
 0x128   :  { %v1944_v42 = vpop.f32.mrf.mxu1  ;;  %2006 = vmatmul.mubr.msk.f32.vlgmr.msra.gmra.mxu0 %vm374_vm1, %v1941_v40  ;;  %2019 = vmatprep.subr.mxu1 %v2514_v44 }
 0x129   :  { %2047 = vmatpush3.msra.mxu0 %v2685_v45  ;;  %2020 = vmatpush3.msra.mxu1 %v2709_v49 }
 0x12a   :  { %v348_v43 = vpop.f32.mrf.mxu1  ;;  %2048 = vmatprep.subr.mxu0 %v2514_v44  ;;  %2021 = vmatprep.subr.mxu1 %v2514_v44 }
 0x12b   :  { %2008 = vmatprep.mubr.msk.f32.mxu0 %vm374_vm1, %v348_v43  ;;  %2049 = vmatpush3.msra.mxu0 %v2691_v46 }
 0x12c   :  { %2009 = vmatmul.mubr.msk.f32.gmra.mxu0 %vm374_vm1, %v1944_v42  ;;  %2050 = vmatprep.subr.mxu0 %v2514_v44  ;;  %v1963_v61 = vpop.f32.mrf.mxu0 }
 0x12d   :  { %2051 = vmatpush3.msra.mxu0 %v2697_v47  ;;  %2022 = vmatpush3.msra.mxu1 %v2715_v50 }
 0x12e   :  { %2052 = vmatprep.subr.mxu0 %v2514_v44  ;;  %2023 = vmatprep.subr.mxu1 %v2514_v44  ;;  %v453_v62 = vpop.f32.mrf.mxu0 }
 0x12f   :  { %2053 = vmatpush3.msra.mxu0 %v2703_v48  ;;  %2024 = vmatpush3.msra.mxu1 %v2721_v51 }
 0x130   :  { %2054 = vmatprep.subr.mxu0 %v2514_v44  ;;  %2025 = vmatprep.subr.mxu1 %v2514_v44 }
 0x131   :  { %2055 = vmatpush3.msra.mxu0 %v2709_v49  ;;  %2026 = vmatpush3.msra.mxu1 %v2727_v52 }
 0x132   :  { %2056 = vmatprep.subr.mxu0 %v2514_v44  ;;  %2027 = vmatprep.subr.mxu1 %v2514_v44  ;;  %v1966_v0 = vpop.f32.mrf.mxu0 }
 0x133   :  { %2057 = vmatpush3.msra.mxu0 %v2715_v50  ;;  %2028 = vmatpush3.msra.mxu1 %v2733_v53 }
 0x134   :  { %2058 = vmatprep.subr.mxu0 %v2514_v44  ;;  %2029 = vmatprep.subr.mxu1 %v2514_v44  ;;  %v463_v3 = vpop.f32.mrf.mxu0 }
 0x135   :  { %2059 = vmatpush3.msra.mxu0 %v2721_v51  ;;  %2030 = vmatpush3.msra.mxu1 %v2739_v54 }
 0x136   :  { %2060 = vmatprep.subr.mxu0 %v2514_v44  ;;  %2031 = vmatprep.subr.mxu1 %v2514_v44 }
 0x137   :  { %2061 = vmatpush3.msra.mxu0 %v2727_v52  ;;  %2032 = vmatpush3.msra.mxu1 %v2745_v55 }
 0x138   :  { %2062 = vmatprep.subr.mxu0 %v2514_v44  ;;  %2033 = vmatprep.subr.mxu1 %v2514_v44 }
 0x139   :  { %2063 = vmatpush3.msra.mxu0 %v2733_v53  ;;  %2034 = vmatpush3.msra.mxu1 %v2751_v56 }
 0x13a   :  { %2064 = vmatprep.subr.mxu0 %v2514_v44  ;;  %2035 = vmatprep.subr.mxu1 %v2514_v44 }
 0x13b   :  { %2065 = vmatpush3.msra.mxu0 %v2739_v54  ;;  %2036 = vmatpush3.msra.mxu1 %v2757_v57 }
 0x13c   :  { %2066 = vmatprep.subr.mxu0 %v2514_v44  ;;  %2037 = vmatprep.subr.mxu1 %v2514_v44 }
 0x13d   :  { %2067 = vmatpush3.msra.mxu0 %v2745_v55  ;;  %2038 = vmatpush3.msra.mxu1 %v2763_v58 }
 0x13e   :  { %2068 = vmatprep.subr.mxu0 %v2514_v44  ;;  %2039 = vmatprep.subr.mxu1 %v2514_v44 }
 0x13f   :  { %2069 = vmatpush3.msra.mxu0 %v2751_v56  ;;  %2040 = vmatpush3.msra.mxu1 %v2769_v59 }
 0x140   :  { %2070 = vmatprep.subr.mxu0 %v2514_v44  ;;  %2041 = vmatprep.subr.mxu1 %v2514_v44 }
 0x141   :  { %2071 = vmatpush3.msra.mxu0 %v2757_v57  ;;  %2042 = vmatpush3.msra.mxu1 %v2775_v60 }
 0x142   :  { %2072 = vmatprep.subr.mxu0 %v2514_v44  ;;  %2078 = vmatprep.mubr.msk.f32.mxu0 %vm2515_vm2, %v2514_v44 }
 0x143   :  { %2073 = vmatpush3.msra.mxu0 %v2763_v58 }
 0x144   :  { %2074 = vmatprep.subr.mxu0 %v2514_v44 }
 0x145   :  { %2075 = vmatpush3.msra.mxu0 %v2769_v59 }
 0x146   :  { %2076 = vmatprep.subr.mxu0 %v2514_v44 }
 0x147   :  { %2077 = vmatpush3.msra.mxu0 %v2775_v60 }
 0x148   :  { %2109 = vmatprep.subr.mxu0 %v1079_v34 }
 0x1e0   :  { %v1985_v63 = vpop.f32.mrf.mxu1 }
 0x1e1   :  { %v556_v14 = vadd.f32 %v1985_v63, %v1963_v61 }
 0x1e2   :  { %v550_v1 = vpop.f32.mrf.mxu1 }
 0x1e3   :  { %v551_v6 = vadd.f32 %v550_v1, %v453_v62 }
 0x1e4   :  { %v1988_v4 = vpop.f32.mrf.mxu1 }
 0x1e5   :  { %v566_v22 = vadd.f32 %v1988_v4, %v1966_v0 }
 0x1e6   :  { %v560_v9 = vpop.f32.mrf.mxu1 }
 0x1e7   :  { %v561_v19 = vadd.f32 %v560_v9, %v463_v3 }
 0x1e8   :  { %v2007_v5 = vpop.f32.mrf.mxu0 }
 0x1e9   :  { %v676_v20 = vadd.f32 %v2007_v5, %v556_v14 }
 0x1ea   :  { %v656_v12 = vpop.f32.mrf.mxu0 }
 0x1eb   :  { %v675_v16 = vadd.f32 %v656_v12, %v551_v6 }
 0x1ec   :  { %v2010_v17 = vpop.f32.mrf.mxu0 }
 0x1ed   :  { %v681_v23 = vadd.f32 %v676_v20, %v675_v16  ;;  %v678_v25 = vadd.f32 %v2010_v17, %v566_v22  ;;  %v1078_v17 = vld [vmem:[#allocation10 + $0xf0] sm:$0xff] }
 0x1ee   :  { %v666_v21 = vpop.f32.mrf.mxu0  ;;  %v1074_v22 = vld [vmem:[#allocation10 + $0xd0] sm:$0xff] }
 0x1ef   :  { %v677_v24 = vadd.f32 %v666_v21, %v561_v19  ;;  %v1077_v19 = vld [vmem:[#allocation10 + $0xe8] sm:$0xff]  ;;  %v1075_v21 = vld [vmem:[#allocation10 + $0xd8] sm:$0xff] }
 0x1f1   :  { %v682_v26 = vadd.f32 %v681_v23, %v677_v24  ;;  %v1073_v23 = vld [vmem:[#allocation10 + $0xc8] sm:$0xff] }
 0x1f3   :  { %v683_v27 = vadd.f32 %v682_v26, %v678_v25  ;;  %v1070_v26 = vld [vmem:[#allocation10 + $0xb0] sm:$0xff] }
 0x1f5   :  { %v684_v28 = vrot.slane %v683_v27, 4 }
 0x1f7   :  { %v685_v29 = vadd.f32 %v684_v28, %v683_v27  ;;  %v1069_v27 = vld [vmem:[#allocation10 + $0xa8] sm:$0xff]  ;;  %v1068_v28 = vld [vmem:[#allocation10 + $0xa0] sm:$0xff] }
 0x1f9   :  { %v686_v30 = vrot.slane %v685_v29, 2 }
 0x1fb   :  { %v687_v31 = vadd.f32 %v686_v30, %v685_v29  ;;  %v1067_v29 = vld [vmem:[#allocation10 + $0x98] sm:$0xff]  ;;  %v1066_v30 = vld [vmem:[#allocation10 + $0x90] sm:$0xff] }
 0x1fd   :  { %v688_v32 = vrot.slane %v687_v31, 1 }
 0x1ff   :  { %v689_v33 = vadd.f32 %v688_v32, %v687_v31  ;;  %v1065_v31 = vld [vmem:[#allocation10 + $0x88] sm:$0xff]  ;;  %v1064_v32 = vld [vmem:[#allocation10 + $0x80] sm:$0xff] }
 0x201   :  { %2044 = vmatmul.mubr.f32.vlgmr.msra.gmra.mxu1 %v689_v33  ;;  %v1266_v33 = vld [vmem:[#allocation10 + $0x178] sm:$0xff] }
 0x202   :  { %2089 = vmatprep.mubr.msk.f32.mxu1 %vm162_vm0, %v2624_v2 }
 0x2c1   :  { %v756_v38 = vpop.f32.mrf.mxu1 }
 0x2c2   :  { %v763_v39 = vrot.slane %v756_v38, %v2786_v37  ;;  %v679_v38 = vld [vmem:[%s2922_s6] sm:$0x1] }
 0x2c3   :  { %v2045_v40 = vpop.f32.mrf.mxu1 }
 0x2c4   :  { %v2789_v41 = vsub.f32 %v675_v16, %v763_v39  ;;  %v2791_v42 = vsub.f32 %v676_v20, %v763_v39  ;;  %v2793_v43 = vsub.f32 %v677_v24, %v763_v39  ;;  %v2795_v61 = vsub.f32 %v678_v25, %v763_v39  ;;  %v1076_v20 = vld [vmem:[#allocation10 + $0xe0] sm:$0xff]  ;;  %v1071_v25 = vld [vmem:[#allocation10 + $0xb8] sm:$0xff] }
 0x2c5   :  { %v1072_v24 = vld [vmem:[#allocation10 + $0xc0] sm:$0xff] }
 0x2c6   :  { %v768_v2 = vmul.f32 %v2789_v41, %v2789_v41  ;;  %v769_v62 = vmul.f32 %v2791_v42, %v2791_v42  ;;  %v770_v63 = vmul.f32 %v2793_v43, %v2793_v43  ;;  %v771_v1 = vmul.f32 %v2795_v61, %v2795_v61 }
 0x2c8   :  { %v772_v0 = vadd.f32 %v769_v62, %v768_v2  ;;  %v1695_v62 = vld [vmem:[%s2923_s7] ss:$0 sm:$0xff] }
 0x2ca   :  { %v773_v3 = vadd.f32 %v772_v0, %v770_v63 }
 0x2cc   :  { %v774_v4 = vadd.f32 %v773_v3, %v771_v1 }
 0x2ce   :  { %v775_v5 = vrot.slane %v774_v4, 4 }
 0x2d0   :  { %v776_v6 = vadd.f32 %v775_v5, %v774_v4 }
 0x2d2   :  { %v777_v9 = vrot.slane %v776_v6, 2 }
 0x2d4   :  { %v778_v12 = vadd.f32 %v777_v9, %v776_v6 }
 0x2d6   :  { %v779_v14 = vrot.slane %v778_v12, 1 }
 0x2d8   :  { %v780_v16 = vadd.f32 %v779_v14, %v778_v12 }
 0x2da   :  { %2079 = vmatmul.mubr.f32.vlgmr.msra.gmra.mxu0 %v780_v16 }
 0x2db   :  { %2110 = vmatpush3.msra.mxu0 %v1079_v34 }
 0x2dc   :  { %2111 = vmatprep.subr.mxu0 %v1078_v17 }
 0x2dd   :  { %2112 = vmatpush3.msra.mxu0 %v1078_v17 }
 0x2de   :  { %2113 = vmatprep.subr.mxu0 %v1077_v19 }
 0x2df   :  { %2114 = vmatpush3.msra.mxu0 %v1077_v19  ;;  %v1265_v19 = vld [vmem:[#allocation10 + $0x170] sm:$0xff] }
 0x2e0   :  { %2115 = vmatprep.subr.mxu0 %v1076_v20 }
 0x2e1   :  { %2116 = vmatpush3.msra.mxu0 %v1076_v20  ;;  %v1260_v20 = vld [vmem:[#allocation10 + $0x148] sm:$0xff] }
 0x2e2   :  { %2117 = vmatprep.subr.mxu0 %v1075_v21 }
 0x2e3   :  { %2118 = vmatpush3.msra.mxu0 %v1075_v21  ;;  %v1058_v21 = vld [vmem:[#allocation10 + $0x58] sm:$0xff] }
 0x2e4   :  { %2119 = vmatprep.subr.mxu0 %v1074_v22 }
 0x2e5   :  { %2120 = vmatpush3.msra.mxu0 %v1074_v22  ;;  %v1055_v22 = vld [vmem:[#allocation10 + $0x40] sm:$0xff] }
 0x2e6   :  { %2121 = vmatprep.subr.mxu0 %v1073_v23 }
 0x2e7   :  { %2122 = vmatpush3.msra.mxu0 %v1073_v23  ;;  %v1054_v23 = vld [vmem:[#allocation10 + $0x38] sm:$0xff] }
 0x2e8   :  { %2123 = vmatprep.subr.mxu0 %v1072_v24 }
 0x2e9   :  { %2124 = vmatpush3.msra.mxu0 %v1072_v24  ;;  %v1052_v24 = vld [vmem:[#allocation10 + $0x28] sm:$0xff] }
 0x2ea   :  { %2125 = vmatprep.subr.mxu0 %v1071_v25 }
 0x2eb   :  { %2126 = vmatpush3.msra.mxu0 %v1071_v25  ;;  %v1051_v25 = vld [vmem:[#allocation10 + $0x20] sm:$0xff] }
 0x2ec   :  { %2127 = vmatprep.subr.mxu0 %v1070_v26 }
 0x2ed   :  { %2128 = vmatpush3.msra.mxu0 %v1070_v26  ;;  %v1259_v26 = vld [vmem:[#allocation10 + $0x140] sm:$0xff] }
 0x2ee   :  { %2129 = vmatprep.subr.mxu0 %v1069_v27 }
 0x2ef   :  { %2130 = vmatpush3.msra.mxu0 %v1069_v27  ;;  %v1050_v27 = vld [vmem:[#allocation10 + $0x18] sm:$0xff] }
 0x2f0   :  { %2131 = vmatprep.subr.mxu0 %v1068_v28 }
 0x2f1   :  { %2132 = vmatpush3.msra.mxu0 %v1068_v28  ;;  %v1258_v28 = vld [vmem:[#allocation10 + $0x138] sm:$0xff] }
 0x2f2   :  { %2133 = vmatprep.subr.mxu0 %v1067_v29 }
 0x2f3   :  { %2134 = vmatpush3.msra.mxu0 %v1067_v29  ;;  %v1049_v29 = vld [vmem:[#allocation10 + $0x10] sm:$0xff] }
 0x2f4   :  { %2135 = vmatprep.subr.mxu0 %v1066_v30 }
 0x2f5   :  { %2136 = vmatpush3.msra.mxu0 %v1066_v30  ;;  %v1257_v30 = vld [vmem:[#allocation10 + $0x130] sm:$0xff] }
 0x2f6   :  { %2137 = vmatprep.subr.mxu0 %v1065_v31 }
 0x2f7   :  { %2138 = vmatpush3.msra.mxu0 %v1065_v31  ;;  %v1048_v31 = vld [vmem:[#allocation10 + $0x8] sm:$0xff] }
 0x2f8   :  { %2139 = vmatprep.subr.mxu0 %v1064_v32 }
 0x2f9   :  { %2140 = vmatpush3.msra.mxu0 %v1064_v32  ;;  %v1256_v32 = vld [vmem:[#allocation10 + $0x128] sm:$0xff] }
 0x2fa   :  { %2185 = vmatprep.subr.mxu0 %v1266_v33 }
 0x39a   :  { %v847_v34 = vpop.f32.mrf.mxu0 }
 0x39b   :  { %v848_v35 = vadd.f32 1e-05, %v847_v34  ;;  %v1255_v34 = vld [vmem:[#allocation10 + $0x120] sm:$0xff] }
 0x39c   :  { %v2080_v36 = vpop.f32.mrf.mxu0 }
 0x39d   :  { %2327 = vrsqrt.f32 %v848_v35  ;;  %v1254_v35 = vld [vmem:[#allocation10 + $0x118] sm:$0xff]  ;;  %v1253_v36 = vld [vmem:[#allocation10 + $0x110] sm:$0xff] }
 0x3aa   :  { %v2328_v39 = vpop.eup %2327 }
 0x3ab   :  { %v852_v40 = vmul.f32 %v2328_v39, %v679_v38  ;;  %v1252_v38 = vld [vmem:[#allocation10 + $0x108] sm:$0xff]  ;;  %v1251_v39 = vld [vmem:[#allocation10 + $0x100] sm:$0xff] }
 0x3ad   :  { %v857_v2 = vrot.slane %v852_v40, %v2786_v37 }
 0x3af   :  { %v862_v63 = vmul.f32 %v857_v2, %v2795_v61  ;;  %v859_v0 = vmul.f32 %v857_v2, %v2789_v41  ;;  %v860_v1 = vmul.f32 %v857_v2, %v2791_v42  ;;  %v861_v3 = vmul.f32 %v857_v2, %v2793_v43  ;;  %v1264_v41 = vld [vmem:[#allocation10 + $0x168] sm:$0xff]  ;;  %v1263_v42 = vld [vmem:[#allocation10 + $0x160] sm:$0xff]  ;;  %v1262_v43 = vld [vmem:[#allocation10 + $0x158] sm:$0xff] }
 0x3b0   :  { %v1061_v61 = vld [vmem:[#allocation10 + $0x70] sm:$0xff] }
 0x3b1   :  { %v872_v4 = vadd.f32 %v1695_v62, %v862_v63  ;;  %v869_v5 = vadd.f32 %v1695_v62, %v859_v0  ;;  %v870_v6 = vadd.f32 %v1695_v62, %v860_v1  ;;  %v871_v9 = vadd.f32 %v1695_v62, %v861_v3 }
 0x3b3   :  { %v876_v12 = vmax.f32 %v872_v4, 0.0  ;;  %v873_v14 = vmax.f32 %v869_v5, 0.0  ;;  %v874_v16 = vmax.f32 %v870_v6, 0.0  ;;  %v875_v17 = vmax.f32 %v871_v9, 0.0 }
 0x3b5   :  { %2081 = vmatprep.subr.mxu1 %v876_v12  ;;  %2141 = vmatprep.mubr.f32.mxu0 %v873_v14 }
 0x3b6   :  { %2082 = vmatpush3.msra.mxu1 %v876_v12  ;;  %2142 = vmatmul.mubr.f32.vlgmr.msra.gmra.mxu0 %v874_v16 }
 0x3b7   :  { %2083 = vmatprep.subr.mxu1 %v875_v17  ;;  %2144 = vmatprep.mubr.f32.mxu0 %v875_v17 }
 0x3b8   :  { %2084 = vmatpush3.msra.mxu1 %v875_v17  ;;  %2186 = vmatpush3.msra.mxu0 %v1266_v33  ;;  %v1047_v33 = vld [vmem:[#allocation10] sm:$0xff] }
 0x3b9   :  { %2085 = vmatprep.subr.mxu1 %v874_v16  ;;  %2187 = vmatprep.subr.mxu0 %v1265_v19 }
 0x3ba   :  { %2086 = vmatpush3.msra.mxu1 %v874_v16  ;;  %2145 = vmatmul.mubr.f32.gmra.mxu0 %v876_v12 }
 0x3bb   :  { %2087 = vmatprep.subr.mxu1 %v873_v14  ;;  %2188 = vmatpush3.msra.mxu0 %v1265_v19 }
 0x3bc   :  { %2088 = vmatpush3.msra.mxu1 %v873_v14  ;;  %2189 = vmatprep.subr.mxu0 %v1264_v41 }
 0x3bd   :  { %2090 = vmatmul.mubr.msk.f32.vlgmr.msra.gmra.mxu1 %vm162_vm0, %v2636_v7  ;;  %2095 = vmatprep.subr.mxu1 %v876_v12  ;;  %v1062_v7 = vld [vmem:[#allocation10 + $0x78] sm:$0xff] }
 0x3be   :  { %2096 = vmatpush3.msra.mxu1 %v876_v12  ;;  %2092 = vmatprep.mubr.msk.f32.mxu1 %vm162_vm0, %v2638_v8  ;;  %v1261_v8 = vld [vmem:[#allocation10 + $0x150] sm:$0xff] }
 0x3bf   :  { %2097 = vmatprep.subr.mxu1 %v875_v17  ;;  %2190 = vmatpush3.msra.mxu0 %v1264_v41 }
 0x3c0   :  { %2098 = vmatpush3.msra.mxu1 %v875_v17  ;;  %2191 = vmatprep.subr.mxu0 %v1263_v42 }
 0x3c1   :  { %2093 = vmatmul.mubr.msk.f32.gmra.mxu1 %vm162_vm0, %v2646_v10  ;;  %2099 = vmatprep.subr.mxu1 %v874_v16  ;;  %v1060_v10 = vld [vmem:[#allocation10 + $0x68] sm:$0xff] }
 0x3c2   :  { %2100 = vmatpush3.msra.mxu1 %v874_v16  ;;  %2103 = vmatprep.mubr.msk.f32.mxu1 %vm162_vm0, %v2649_v11  ;;  %v1059_v11 = vld [vmem:[#allocation10 + $0x60] sm:$0xff] }
 0x3c3   :  { %2101 = vmatprep.subr.mxu1 %v873_v14  ;;  %2192 = vmatpush3.msra.mxu0 %v1263_v42 }
 0x3c4   :  { %2102 = vmatpush3.msra.mxu1 %v873_v14  ;;  %2193 = vmatprep.subr.mxu0 %v1262_v43 }
 0x3c5   :  { %2104 = vmatmul.mubr.msk.f32.vlgmr.msra.gmra.mxu1 %vm162_vm0, %v2658_v13  ;;  %2147 = vmatprep.subr.mxu1 %v1062_v7  ;;  %v1057_v13 = vld [vmem:[#allocation10 + $0x50] sm:$0xff] }
 0x3c6   :  { %2106 = vmatprep.mubr.msk.f32.mxu1 %vm162_vm0, %v2660_v15  ;;  %2148 = vmatpush3.msra.mxu1 %v1062_v7  ;;  %v1056_v15 = vld [vmem:[#allocation10 + $0x48] sm:$0xff] }
 0x3c7   :  { %2149 = vmatprep.subr.mxu1 %v1061_v61  ;;  %2194 = vmatpush3.msra.mxu0 %v1262_v43 }
 0x3c8   :  { %2150 = vmatpush3.msra.mxu1 %v1061_v61  ;;  %2195 = vmatprep.subr.mxu0 %v1261_v8  ;;  %v2331_v61 = vld [vmem:[#allocation2] sm:$0xff] }
 0x3c9   :  { %2107 = vmatmul.mubr.msk.f32.gmra.mxu1 %vm162_vm0, %v2666_v18  ;;  %2151 = vmatprep.subr.mxu1 %v1060_v10  ;;  %v1053_v18 = vld [vmem:[#allocation10 + $0x30] sm:$0xff] }
 0x3ca   :  { %2152 = vmatpush3.msra.mxu1 %v1060_v10  ;;  %2196 = vmatpush3.msra.mxu0 %v1261_v8  ;;  %v1557_v8 = vld [vmem:[#allocation13 + $0x38] sm:$0xff]  ;;  %v1556_v10 = vld [vmem:[#allocation13 + $0x30] sm:$0xff] }
 0x3cb   :  { %2153 = vmatprep.subr.mxu1 %v1059_v11  ;;  %2197 = vmatprep.subr.mxu0 %v1260_v20 }
 0x3cc   :  { %2154 = vmatpush3.msra.mxu1 %v1059_v11  ;;  %2198 = vmatpush3.msra.mxu0 %v1260_v20  ;;  %v1555_v11 = vld [vmem:[#allocation13 + $0x28] sm:$0xff]  ;;  %v1554_v20 = vld [vmem:[#allocation13 + $0x20] sm:$0xff] }
 0x3cd   :  { %2155 = vmatprep.subr.mxu1 %v1058_v21  ;;  %2199 = vmatprep.subr.mxu0 %v1259_v26 }
 0x3ce   :  { %2156 = vmatpush3.msra.mxu1 %v1058_v21  ;;  %2200 = vmatpush3.msra.mxu0 %v1259_v26  ;;  %v1553_v21 = vld [vmem:[#allocation13 + $0x18] sm:$0xff] }
 0x3cf   :  { %2157 = vmatprep.subr.mxu1 %v1057_v13  ;;  %2201 = vmatprep.subr.mxu0 %v1258_v28 }
 0x3d0   :  { %2158 = vmatpush3.msra.mxu1 %v1057_v13  ;;  %2202 = vmatpush3.msra.mxu0 %v1258_v28  ;;  %v1552_v13 = vld [vmem:[#allocation13 + $0x10] sm:$0xff] }
 0x3d1   :  { %2159 = vmatprep.subr.mxu1 %v1056_v15  ;;  %2203 = vmatprep.subr.mxu0 %v1257_v30 }
 0x3d2   :  { %2160 = vmatpush3.msra.mxu1 %v1056_v15  ;;  %2204 = vmatpush3.msra.mxu0 %v1257_v30  ;;  %v1551_v15 = vld [vmem:[#allocation13 + $0x8] sm:$0xff] }
 0x3d3   :  { %2161 = vmatprep.subr.mxu1 %v1055_v22  ;;  %2205 = vmatprep.subr.mxu0 %v1256_v32 }
 0x3d4   :  { %2162 = vmatpush3.msra.mxu1 %v1055_v22  ;;  %2206 = vmatpush3.msra.mxu0 %v1256_v32  ;;  %v1550_v22 = vld [vmem:[#allocation13] sm:$0xff] }
 0x3d5   :  { %2163 = vmatprep.subr.mxu1 %v1054_v23  ;;  %2207 = vmatprep.subr.mxu0 %v1255_v34 }
 0x3d6   :  { %2164 = vmatpush3.msra.mxu1 %v1054_v23  ;;  %2208 = vmatpush3.msra.mxu0 %v1255_v34  ;;  %v2332_v23 = vld [vmem:[#allocation2 + $0x8] sm:$0xff] }
 0x3d7   :  { %2165 = vmatprep.subr.mxu1 %v1053_v18  ;;  %2209 = vmatprep.subr.mxu0 %v1254_v35 }
 0x3d8   :  { %2166 = vmatpush3.msra.mxu1 %v1053_v18  ;;  %2210 = vmatpush3.msra.mxu0 %v1254_v35  ;;  %v2333_v18 = vld [vmem:[#allocation2 + $0x10] sm:$0xff] }
 0x3d9   :  { %2167 = vmatprep.subr.mxu1 %v1052_v24  ;;  %2211 = vmatprep.subr.mxu0 %v1253_v36 }
 0x3da   :  { %2168 = vmatpush3.msra.mxu1 %v1052_v24  ;;  %2212 = vmatpush3.msra.mxu0 %v1253_v36  ;;  %v2334_v24 = vld [vmem:[#allocation2 + $0x18] sm:$0xff] }
 0x3db   :  { %2169 = vmatprep.subr.mxu1 %v1051_v25  ;;  %2213 = vmatprep.subr.mxu0 %v1252_v38 }
 0x3dc   :  { %2170 = vmatpush3.msra.mxu1 %v1051_v25  ;;  %2214 = vmatpush3.msra.mxu0 %v1252_v38 }
 0x3dd   :  { %2171 = vmatprep.subr.mxu1 %v1050_v27  ;;  %2215 = vmatprep.subr.mxu0 %v1251_v39 }
 0x3de   :  { %2172 = vmatpush3.msra.mxu1 %v1050_v27  ;;  %2216 = vmatpush3.msra.mxu0 %v1251_v39 }
 0x3df   :  { %2173 = vmatprep.subr.mxu1 %v1049_v29  ;;  %2258 = vmatprep.subr.mxu0 %v2514_v44 }
 0x3e0   :  { %2174 = vmatpush3.msra.mxu1 %v1049_v29 }
 0x3e1   :  { %2175 = vmatprep.subr.mxu1 %v1048_v31 }
 0x3e2   :  { %2176 = vmatpush3.msra.mxu1 %v1048_v31 }
 0x3e3   :  { %2177 = vmatprep.subr.mxu1 %v1047_v33 }
 0x3e4   :  { %2178 = vmatpush3.msra.mxu1 %v1047_v33 }
 0x3e5   :  { %2223 = vmatprep.subr.mxu1 %v2514_v44 }
 0x47d   :  { %v2091_v40 = vpop.f32.mrf.mxu1 }
 0x47f   :  { %v943_v2 = vpop.f32.mrf.mxu1 }
 0x480   :  { %2179 = vmatprep.mubr.f32.mxu1 %v943_v2 }
 0x481   :  { %v2094_v62 = vpop.f32.mrf.mxu1  ;;  %2180 = vmatmul.mubr.f32.vlgmr.msra.gmra.mxu1 %v2091_v40 }
 0x482   :  { %2224 = vmatpush3.msra.mxu1 %v2685_v45 }
 0x483   :  { %v953_v63 = vpop.f32.mrf.mxu1  ;;  %2225 = vmatprep.subr.mxu1 %v2514_v44 }
 0x484   :  { %2182 = vmatprep.mubr.f32.mxu1 %v953_v63  ;;  %2226 = vmatpush3.msra.mxu1 %v2691_v46 }
 0x485   :  { %v2105_v0 = vpop.f32.mrf.mxu1  ;;  %2183 = vmatmul.mubr.f32.gmra.mxu1 %v2094_v62  ;;  %2227 = vmatprep.subr.mxu1 %v2514_v44 }
 0x486   :  { %2228 = vmatpush3.msra.mxu1 %v2697_v47  ;;  %2255 = vmatprep.mubr.msk.f32.mxu1 %vm2515_vm2, %v2514_v44 }
 0x487   :  { %v1028_v1 = vpop.f32.mrf.mxu1  ;;  %2229 = vmatprep.subr.mxu1 %v2514_v44 }
 0x488   :  { %2217 = vmatprep.mubr.f32.mxu0 %v1028_v1  ;;  %2230 = vmatpush3.msra.mxu1 %v2703_v48 }
 0x489   :  { %v2108_v3 = vpop.f32.mrf.mxu1  ;;  %2218 = vmatmul.mubr.f32.vlgmr.msra.gmra.mxu0 %v2105_v0  ;;  %2231 = vmatprep.subr.mxu1 %v2514_v44 }
 0x48a   :  { %2232 = vmatpush3.msra.mxu1 %v2709_v49  ;;  %2259 = vmatpush3.msra.mxu0 %v2685_v45  ;;  %v2143_v45 = vpop.f32.mrf.mxu0 }
 0x48b   :  { %v1038_v4 = vpop.f32.mrf.mxu1  ;;  %2233 = vmatprep.subr.mxu1 %v2514_v44  ;;  %2260 = vmatprep.subr.mxu0 %v2514_v44 }
 0x48c   :  { %2220 = vmatprep.mubr.f32.mxu0 %v1038_v4  ;;  %2234 = vmatpush3.msra.mxu1 %v2715_v50 }
 0x48d   :  { %2221 = vmatmul.mubr.f32.gmra.mxu0 %v2108_v3  ;;  %2235 = vmatprep.subr.mxu1 %v2514_v44 }
 0x48e   :  { %2236 = vmatpush3.msra.mxu1 %v2721_v51  ;;  %2261 = vmatpush3.msra.mxu0 %v2691_v46  ;;  %v1146_v46 = vpop.f32.mrf.mxu0 }
 0x48f   :  { %2237 = vmatprep.subr.mxu1 %v2514_v44  ;;  %2262 = vmatprep.subr.mxu0 %v2514_v44 }
 0x490   :  { %2238 = vmatpush3.msra.mxu1 %v2727_v52  ;;  %2263 = vmatpush3.msra.mxu0 %v2697_v47 }
 0x491   :  { %2239 = vmatprep.subr.mxu1 %v2514_v44  ;;  %2264 = vmatprep.subr.mxu0 %v2514_v44 }
 0x492   :  { %2240 = vmatpush3.msra.mxu1 %v2733_v53  ;;  %2265 = vmatpush3.msra.mxu0 %v2703_v48  ;;  %v2146_v48 = vpop.f32.mrf.mxu0 }
 0x493   :  { %2241 = vmatprep.subr.mxu1 %v2514_v44  ;;  %2266 = vmatprep.subr.mxu0 %v2514_v44 }
 0x494   :  { %2242 = vmatpush3.msra.mxu1 %v2739_v54  ;;  %2267 = vmatpush3.msra.mxu0 %v2709_v49 }
 0x495   :  { %2243 = vmatprep.subr.mxu1 %v2514_v44  ;;  %2268 = vmatprep.subr.mxu0 %v2514_v44 }
 0x496   :  { %2244 = vmatpush3.msra.mxu1 %v2745_v55  ;;  %2269 = vmatpush3.msra.mxu0 %v2715_v50  ;;  %v1156_v50 = vpop.f32.mrf.mxu0 }
 0x497   :  { %2245 = vmatprep.subr.mxu1 %v2514_v44  ;;  %2270 = vmatprep.subr.mxu0 %v2514_v44 }
 0x498   :  { %2246 = vmatpush3.msra.mxu1 %v2751_v56  ;;  %2271 = vmatpush3.msra.mxu0 %v2721_v51 }
 0x499   :  { %2247 = vmatprep.subr.mxu1 %v2514_v44  ;;  %2272 = vmatprep.subr.mxu0 %v2514_v44 }
 0x49a   :  { %2248 = vmatpush3.msra.mxu1 %v2757_v57  ;;  %2273 = vmatpush3.msra.mxu0 %v2727_v52 }
 0x49b   :  { %2249 = vmatprep.subr.mxu1 %v2514_v44  ;;  %2274 = vmatprep.subr.mxu0 %v2514_v44 }
 0x49c   :  { %2250 = vmatpush3.msra.mxu1 %v2763_v58  ;;  %2275 = vmatpush3.msra.mxu0 %v2733_v53 }
 0x49d   :  { %2251 = vmatprep.subr.mxu1 %v2514_v44  ;;  %2276 = vmatprep.subr.mxu0 %v2514_v44 }
 0x49e   :  { %2252 = vmatpush3.msra.mxu1 %v2769_v59  ;;  %2277 = vmatpush3.msra.mxu0 %v2739_v54 }
 0x49f   :  { %2253 = vmatprep.subr.mxu1 %v2514_v44  ;;  %2278 = vmatprep.subr.mxu0 %v2514_v44 }
 0x4a0   :  { %2254 = vmatpush3.msra.mxu1 %v2775_v60  ;;  %2279 = vmatpush3.msra.mxu0 %v2745_v55 }
 0x4a1   :  { %2280 = vmatprep.subr.mxu0 %v2514_v44  ;;  %2290 = vmatprep.mubr.msk.f32.mxu0 %vm2515_vm2, %v2514_v44 }
 0x4a2   :  { %2281 = vmatpush3.msra.mxu0 %v2751_v56  ;;  %2293 = vmatprep.subr.mxu1 %v1557_v8 }
 0x4a3   :  { %2282 = vmatprep.subr.mxu0 %v2514_v44 }
 0x4a4   :  { %2283 = vmatpush3.msra.mxu0 %v2757_v57 }
 0x4a5   :  { %2284 = vmatprep.subr.mxu0 %v2514_v44 }
 0x4a6   :  { %2285 = vmatpush3.msra.mxu0 %v2763_v58 }
 0x4a7   :  { %2286 = vmatprep.subr.mxu0 %v2514_v44 }
 0x4a8   :  { %2287 = vmatpush3.msra.mxu0 %v2769_v59 }
 0x4a9   :  { %2288 = vmatprep.subr.mxu0 %v2514_v44 }
 0x4aa   :  { %2289 = vmatpush3.msra.mxu0 %v2775_v60 }
 0x541   :  { %v2181_v47 = vpop.f32.mrf.mxu1 }
 0x542   :  { %v1237_v56 = vadd.f32 %v2181_v47, %v2143_v45  ;;  %v1356_v47 = vld [vmem:[%s2924_s8] sm:$0x1]  ;;  %s2516_s8 = smov [#allocation14]  }
 0x543   :  { %v1231_v49 = vpop.f32.mrf.mxu1  ;;  %s1660_s3 = sshll.u32 %s2516_s8, 4  ;;  %s1661_s3 = int_to_ptr.vmem [resolvable:$true] %s1660_s3 }
 0x544   :  { %v1232_v53 = vadd.f32 %v1231_v49, %v1146_v46  ;;  %p2480_p8 = scmp.lt.s32.totalorder %s1661_s3, %s1661_s3 }
 0x545   :  { %v2184_v51 = vpop.f32.mrf.mxu1 }
 0x546   :  { %v1247_v44 = vadd.f32 %v2184_v51, %v2146_v48 }
 0x547   :  { %v1241_v54 = vpop.f32.mrf.mxu1 }
 0x548   :  { %v1242_v5 = vadd.f32 %v1241_v54, %v1156_v50 }
 0x549   :  { %v2219_v52 = vpop.f32.mrf.mxu0 }
 0x54a   :  { %v1353_v59 = vadd.f32 %v2219_v52, %v1237_v56  ;;  %v1704_v52 = vld [vmem:[%s2925_s9] ss:$0 sm:$0xff]  ;;  %s2475_s9 = scalar_lea.vmem %s1661_s3, 512 }
 0x54b   :  { %v1333_v55 = vpop.f32.mrf.mxu0  ;;  %p2476_p7 = scmp.ne.s32.totalorder %s1661_s3, %s2475_s9  ;;  %p2481_p9 = scmp.lt.s32.totalorder %s2475_s9, %s2475_s9 }
 0x54c   :  { %v1352_v57 = vadd.f32 %v1333_v55, %v1232_v53 }
 0x54d   :  { %v2222_v58 = vpop.f32.mrf.mxu0  ;;  %p2482_p10 = por %p2481_p9, %p2480_p8 }
 0x54e   :  { %v1358_v9 = vadd.f32 %v1353_v59, %v1352_v57  ;;  %v1355_v12 = vadd.f32 %v2222_v58, %v1247_v44 }
 0x54f   :  { %v1343_v6 = vpop.f32.mrf.mxu0  ;;  %p2483_p11 = pnand %p2482_p10, %p2476_p7 }
 0x550   :  { %v1354_v60 = vadd.f32 %v1343_v6, %v1242_v5 }
 0x552   :  { %v1359_v14 = vadd.f32 %v1358_v9, %v1354_v60 }
 0x554   :  { %v1360_v16 = vadd.f32 %v1359_v14, %v1355_v12 }
 0x556   :  { %v1361_v17 = vrot.slane %v1360_v16, 4 }
 0x558   :  { %v1362_v19 = vadd.f32 %v1361_v17, %v1360_v16 }
 0x55a   :  { %v1363_v41 = vrot.slane %v1362_v19, 2 }
 0x55c   :  { %v1364_v42 = vadd.f32 %v1363_v41, %v1362_v19 }
 0x55e   :  { %v1365_v43 = vrot.slane %v1364_v42, 1 }
 0x560   :  { %v1366_v7 = vadd.f32 %v1365_v43, %v1364_v42 }
 0x562   :  { %2256 = vmatmul.mubr.f32.vlgmr.msra.gmra.mxu1 %v1366_v7 }
 0x563   :  { %2309 = vmatprep.mubr.msk.f32.mxu1 %vm374_vm1, %v2331_v61  ;;  %2294 = vmatpush3.msra.mxu1 %v1557_v8 }
 0x564   :  { %2295 = vmatprep.subr.mxu1 %v1556_v10 }
 0x565   :  { %2296 = vmatpush3.msra.mxu1 %v1556_v10 }
 0x566   :  { %2297 = vmatprep.subr.mxu1 %v1555_v11 }
 0x567   :  { %2298 = vmatpush3.msra.mxu1 %v1555_v11 }
 0x568   :  { %2299 = vmatprep.subr.mxu1 %v1554_v20 }
 0x569   :  { %2300 = vmatpush3.msra.mxu1 %v1554_v20 }
 0x56a   :  { %2301 = vmatprep.subr.mxu1 %v1553_v21 }
 0x56b   :  { %2302 = vmatpush3.msra.mxu1 %v1553_v21 }
 0x56c   :  { %2303 = vmatprep.subr.mxu1 %v1552_v13 }
 0x56d   :  { %2304 = vmatpush3.msra.mxu1 %v1552_v13 }
 0x56e   :  { %2305 = vmatprep.subr.mxu1 %v1551_v15 }
 0x56f   :  { %2306 = vmatpush3.msra.mxu1 %v1551_v15 }
 0x570   :  { %2307 = vmatprep.subr.mxu1 %v1550_v22 }
 0x571   :  { %2308 = vmatpush3.msra.mxu1 %v1550_v22 }
 0x572   :  { %2310 = vmatmul.mubr.msk.f32.vlgmr.msra.gmra.mxu1 %vm374_vm1, %v2332_v23 }
 0x573   :  { %2312 = vmatprep.mubr.msk.f32.mxu1 %vm374_vm1, %v2333_v18 }
 0x576   :  { %2313 = vmatmul.mubr.msk.f32.gmra.mxu1 %vm374_vm1, %v2334_v24 }
 0x622   :  { %v1433_v25 = vpop.f32.mrf.mxu1 }
 0x623   :  { %v1440_v26 = vrot.slane %v1433_v25, %v2786_v37 }
 0x624   :  { %v2257_v27 = vpop.f32.mrf.mxu1 }
 0x625   :  { %v1441_v28 = vsub.f32 %v1352_v57, %v1440_v26  ;;  %v1442_v29 = vsub.f32 %v1353_v59, %v1440_v26  ;;  %v1443_v30 = vsub.f32 %v1354_v60, %v1440_v26  ;;  %v1444_v31 = vsub.f32 %v1355_v12, %v1440_v26 }
 0x627   :  { %v1445_v32 = vmul.f32 %v1441_v28, %v1441_v28  ;;  %v1446_v33 = vmul.f32 %v1442_v29, %v1442_v29  ;;  %v1447_v34 = vmul.f32 %v1443_v30, %v1443_v30  ;;  %v1448_v36 = vmul.f32 %v1444_v31, %v1444_v31 }
 0x629   :  { %v1449_v35 = vadd.f32 %v1446_v33, %v1445_v32 }
 0x62b   :  { %v1450_v38 = vadd.f32 %v1449_v35, %v1447_v34 }
 0x62d   :  { %v1451_v39 = vadd.f32 %v1450_v38, %v1448_v36 }
 0x62f   :  { %v1452_v40 = vrot.slane %v1451_v39, 4 }
 0x631   :  { %v1453_v2 = vadd.f32 %v1452_v40, %v1451_v39 }
 0x632   :  { %v2311_v46 = vpop.f32.mrf.mxu1 }
 0x633   :  { %v1454_v62 = vrot.slane %v1453_v2, 2 }
 0x634   :  { %v1624_v49 = vpop.f32.mrf.mxu1 }
 0x635   :  { %v1455_v63 = vadd.f32 %v1454_v62, %v1453_v2 }
 0x636   :  { %v2314_v53 = vpop.f32.mrf.mxu1 }
 0x637   :  { %v1456_v0 = vrot.slane %v1455_v63, 1 }
 0x638   :  { %v1634_v44 = vpop.f32.mrf.mxu1 }
 0x639   :  { %v1457_v1 = vadd.f32 %v1456_v0, %v1455_v63 }
 0x63b   :  { %2291 = vmatmul.mubr.f32.vlgmr.msra.gmra.mxu0 %v1457_v1 }
 0x6fb   :  { %v1524_v3 = vpop.f32.mrf.mxu0 }
 0x6fc   :  { %v1525_v4 = vadd.f32 1e-05, %v1524_v3 }
 0x6fd   :  { %v2292_v45 = vpop.f32.mrf.mxu0 }
 0x6fe   :  { %2329 = vrsqrt.f32 %v1525_v4 }
 0x70b   :  { %v2330_v48 = vpop.eup %2329 }
 0x70c   :  { %v1529_v50 = vmul.f32 %v2330_v48, %v1356_v47 }
 0x70e   :  { %v1534_v51 = vrot.slane %v1529_v50, %v2786_v37 }
 0x710   :  { %v1537_v54 = vmul.f32 %v1534_v51, %v1442_v29  ;;  %v1536_v55 = vmul.f32 %v1534_v51, %v1441_v28  ;;  %v1539_v56 = vmul.f32 %v1534_v51, %v1444_v31  ;;  %v1538_v57 = vmul.f32 %v1534_v51, %v1443_v30 }
 0x712   :  { %v1547_v58 = vadd.f32 %v1704_v52, %v1537_v54  ;;  %v1546_v5 = vadd.f32 %v1704_v52, %v1536_v55  ;;  %v1549_v59 = vadd.f32 %v1704_v52, %v1539_v56  ;;  %v1548_v6 = vadd.f32 %v1704_v52, %v1538_v57 }
 0x714   :  { %v1644_v9 = vadd.f32 %v2311_v46, %v1547_v58  ;;  %v1643_v60 = vadd.f32 %v1624_v49, %v1546_v5  ;;  %v1646_v12 = vadd.f32 %v2314_v53, %v1549_v59  ;;  %v1645_v37 = vadd.f32 %v1634_v44, %v1548_v6 }
 0x716   :  { %v1648_v14 = vmax.f32 %v1644_v9, 0.0  ;;  %v1647_v16 = vmax.f32 %v1643_v60, 0.0  ;;  %v1650_v17 = vmax.f32 %v1646_v12, 0.0  ;;  %v1649_v19 = vmax.f32 %v1645_v37, 0.0 }
 0x718   :  { %1652 = vst [vmem:[#allocation14 + $0x8] sm:$0xff] %v1648_v14  ;;  %1651 = vst [vmem:[#allocation14] sm:$0xff] %v1647_v16 }
 0x719   :  { %1654 = vst [vmem:[#allocation14 + $0x18] sm:$0xff] %v1650_v17  ;;  %1653 = vst [vmem:[#allocation14 + $0x10] sm:$0xff] %v1649_v19 }
 0x71a   :  { %2486 = shalt.err (!%p2483_p11)
}
 0x71b   :  { %1666 = dma.vmem_to_hbm [thread:$0]  %s1661_s3, 512, %s2927_s11, [#allocation4], %s2507_s22, %s2507_s22, %s2508_s23  }
 0x71c   :  { %2503 = dma.done.wait [#allocation4], 512  }
 0x71d   :  { %2504 = vsyncadd [#allocation4], 4294966784 }
 0x71e   :  { %1670 = vsyncpa [#allocation3], 1 }
 0x71f   :  { %1671 = vsyncpa [#allocation6], 1 }
 0x720   :  { %1672 = vsyncpa [#allocation9], 1 }
 0x721   :  { %1673 = vsyncpa [#allocation12], 1 }
 0x722   :  { %1674 = vsyncpa [#allocation4], 1 }

</bundles_post_ra>
